<compile_context>
chip_gen: v7x
topology: tpu7x:2x2x1
jax: 0.10.0
libtpu: 0.0.40
codegen_flags: <defaults>
</compile_context>

<pallas_src>
import functools

import jax
import jax.numpy as jnp
from jax.experimental import pallas as pl
from jax.experimental.pallas import tpu as pltpu

_LANE = 128


def _round_up(c, m=_LANE):
    return ((c + m - 1) // m) * m


def _vmem_limit_bytes():
    """~75% of physical VMEM (capped at 96 MiB), with a v7x-safe fallback."""
    try:
        cap = pltpu.get_tpu_info().vmem_capacity_bytes
    except Exception:
        cap = 64 * 1024 * 1024
    return int(min(cap * 3 // 4, 96 * 1024 * 1024))


def _causal_shift(inp, shift):
    """tap[t] = inp[t - shift] for t >= shift else 0 (static slice + zero prefix,
    all in-VMEM; never crosses the sequence boundary)."""
    L = inp.shape[0]
    if shift == 0:
        return inp
    if shift >= L:
        return jnp.zeros_like(inp)
    zeros = jnp.zeros((shift,) + inp.shape[1:], inp.dtype)
    return jnp.concatenate([zeros, inp[: L - shift]], axis=0)


# ---------------------------------------------------------------------------
# Fused whole-network kernel (one grid step = one full sequence, all blocks)
# ---------------------------------------------------------------------------
def _make_tcn_kernel(L, K, block_meta):
    """block_meta: tuple of (dilation, has_downsample) per TemporalBlock.

    Ref order:
      x_ref : (1, L, C0p)  input activations (channels padded to 128 lanes)
      per block: w1 (K*Cinp, Coutp) bf16, b1 (1, Coutp) f32,
                 w2 (K*Coutp, Coutp) bf16, b2 (1, Coutp) f32,
                 [wd (Cinp, Coutp) bf16, bd (1, Coutp) f32]  if Cin != Cout
      o_ref : (1, L, Cfp) f32
    """

    def kernel(*refs):
        it = iter(refs)
        x_ref = next(it)
        blk_refs = []
        for _, has_ds in block_meta:
            w1 = next(it); b1 = next(it); w2 = next(it); b2 = next(it)
            wd = next(it) if has_ds else None
            bd = next(it) if has_ds else None
            blk_refs.append((w1, b1, w2, b2, wd, bd))
        o_ref = next(it)

        def causal_conv(inp_f32, dilation, w_ref, b_ref):
            # K causal taps concatenated along lanes -> single MXU matmul.
            taps = [_causal_shift(inp_f32, (K - 1 - k) * dilation)
                    for k in range(K)]
            wide = taps[0] if K == 1 else jnp.concatenate(taps, axis=-1)
            acc = jnp.dot(wide.astype(jnp.bfloat16), w_ref[...],
                          preferred_element_type=jnp.float32)
            return acc + b_ref[...]

        h = x_ref[0].astype(jnp.float32)                      # (L, C_pad)
        for (dilation, has_ds), (w1, b1, w2, b2, wd, bd) in zip(block_meta,
                                                                blk_refs):
            # conv1 -> chomp (implicit in causal taps) -> ReLU -> dropout(id)
            h1 = jnp.maximum(causal_conv(h, dilation, w1, b1), 0.0)
            # conv2 -> chomp -> ReLU -> dropout(id)
            h2 = jnp.maximum(causal_conv(h1, dilation, w2, b2), 0.0)
            # residual branch: identity or 1x1 downsample conv
            if has_ds:
                res = jnp.dot(h.astype(jnp.bfloat16), wd[...],
                              preferred_element_type=jnp.float32) + bd[...]
            else:
                res = h
            h = jnp.maximum(h2 + res, 0.0)
        o_ref[0] = h.astype(o_ref.dtype)

    return kernel


# ---------------------------------------------------------------------------
# Plain-JAX glue: weight-norm reparametrization + lane padding + pallas_call
# ---------------------------------------------------------------------------
def _weight_norm(v, g):
    """PyTorch weight_norm (dim=0 for Conv1d): W = g * v / ||v||_(1,2)."""
    norm = jnp.sqrt(jnp.sum(v * v, axis=(1, 2), keepdims=True))
    return g * v / norm


def tcn_forward(x_ncl, params, *, kernel_size):
    """x_ncl: (N, num_inputs, L) f32 -> (N, num_channels[-1], L) f32."""
    N, C0, L = x_ncl.shape
    K = kernel_size
    C0p = _round_up(C0)

    # (N, C, L) -> (N, L, C_pad): channels on lanes, zero-padded to 128.
    x = jnp.transpose(x_ncl, (0, 2, 1)).astype(jnp.float32)
    x = jnp.pad(x, ((0, 0), (0, 0), (0, C0p - C0)))

    inputs = [x]
    in_specs = [pl.BlockSpec((1, L, C0p), lambda n: (n, 0, 0))]
    block_meta = []

    cin, cinp = C0, C0p
    for i, p in enumerate(params):
        dilation = 2 ** i
        w1 = _weight_norm(p["v1"], p["g1"])                  # (Cout, Cin, K)
        w2 = _weight_norm(p["v2"], p["g2"])                  # (Cout, Cout, K)
        cout = w1.shape[0]
        coutp = _round_up(cout)
        has_ds = p["wd"] is not None

        def fuse_taps(w, c_in, c_inp, c_out, c_outp):
            # (Cout, Cin, K) -> taps (K, Cin, Cout) -> pad -> (K*Cinp, Coutp)
            taps = jnp.transpose(w, (2, 1, 0))
            taps = jnp.pad(taps, ((0, 0), (0, c_inp - c_in),
                                  (0, c_outp - c_out)))
            return taps.reshape(K * c_inp, c_outp).astype(jnp.bfloat16)

        w1f = fuse_taps(w1, cin, cinp, cout, coutp)
        w2f = fuse_taps(w2, cout, coutp, cout, coutp)
        b1 = jnp.pad(p["b1"], (0, coutp - cout)).reshape(1, coutp)
        b2 = jnp.pad(p["b2"], (0, coutp - cout)).reshape(1, coutp)
        blk_inputs = [w1f, b1.astype(jnp.float32), w2f, b2.astype(jnp.float32)]

        if has_ds:
            wd = jnp.transpose(p["wd"][:, :, 0], (1, 0))     # (Cin, Cout)
            wd = jnp.pad(wd, ((0, cinp - cin),
                              (0, coutp - cout))).astype(jnp.bfloat16)
            bd = jnp.pad(p["bd"], (0, coutp - cout)).reshape(1, coutp)
            blk_inputs += [wd, bd.astype(jnp.float32)]

        inputs += blk_inputs
        # Weights/biases: full-array blocks with a constant index_map so they
        # stay VMEM-resident across all grid steps.  All are 2-D.
        in_specs += [pl.BlockSpec(a.shape, lambda n: (0, 0))
                     for a in blk_inputs]
        block_meta.append((dilation, has_ds))
        cin, cinp = cout, coutp

    cf, cfp = cin, cinp
    kernel = _make_tcn_kernel(L, K, tuple(block_meta))

    out = pl.pallas_call(
        kernel,
        out_shape=jax.ShapeDtypeStruct((N, L, cfp), jnp.float32),
        grid_spec=pltpu.PrefetchScalarGridSpec(
            num_scalar_prefetch=0,
            grid=(N,),
            in_specs=in_specs,
            out_specs=pl.BlockSpec((1, L, cfp), lambda n: (n, 0, 0)),
        ),
        compiler_params=pltpu.CompilerParams(
            dimension_semantics=("parallel",),
            vmem_limit_bytes=_vmem_limit_bytes(),
        ),
    )(*inputs)

    out = out[:, :, :cf]                         # drop lane padding
    return jnp.transpose(out, (0, 2, 1))         # (N, Cf, L)


# ---------------------------------------------------------------------------
# Synthetic parameter init (PyTorch layout: weight_norm stores v (Cout,Cin,K)
# and g (Cout,1,1); g initialized to ||v|| so the effective weight == v,
# matching init_weights' normal_(0, 0.01)).
# ---------------------------------------------------------------------------
def init_params(key, num_inputs, num_channels, kernel_size):
    params = []
    cin = num_inputs
    for cout in num_channels:
        key, k1, k2, k3, k4, k5, k6 = jax.random.split(key, 7)
        v1 = jax.random.normal(k1, (cout, cin, kernel_size), jnp.float32) * 0.01
        g1 = jnp.sqrt(jnp.sum(v1 * v1, axis=(1, 2), keepdims=True))
        b1 = jax.random.normal(k2, (cout,), jnp.float32) * 0.01
        v2 = jax.random.normal(k3, (cout, cout, kernel_size), jnp.float32) * 0.01
        g2 = jnp.sqrt(jnp.sum(v2 * v2, axis=(1, 2), keepdims=True))
        b2 = jax.random.normal(k4, (cout,), jnp.float32) * 0.01
        if cin != cout:
            wd = jax.random.normal(k5, (cout, cin, 1), jnp.float32) * 0.01
            bd = jax.random.normal(k6, (cout,), jnp.float32) * 0.01
        else:
            wd, bd = None, None
        params.append(dict(v1=v1, g1=g1, b1=b1, v2=v2, g2=g2, b2=b2,
                           wd=wd, bd=bd))
        cin = cout
    return params


if __name__ == "__main__":
    key = jax.random.PRNGKey(0)
    key, kx = jax.random.split(key)

    # Small shapes consistent with a TCN: (batch, input channels, sequence len)
    N, C_IN, L = 2, 16, 64
    NUM_CHANNELS = (64, 128, 128)    # dilations 1, 2, 4; last block is Cin==Cout
    KERNEL_SIZE = 2

    x = jax.random.normal(kx, (N, C_IN, L), jnp.float32)
    params = init_params(key, C_IN, NUM_CHANNELS, KERNEL_SIZE)

    fwd = jax.jit(functools.partial(tcn_forward, kernel_size=KERNEL_SIZE))
    out = jax.block_until_ready(fwd(x, params))
    assert out.shape == (N, NUM_CHANNELS[-1], L), out.shape
    print("KERNEL_OK")
</pallas_src>

<mosaic_0001>
module attributes {stable_mosaic.version = 11 : i64} {
  func.func @kernel(%arg0: i32, %arg1: memref<1x64x128xf32, #tpu.memory_space<vmem>>, %arg2: memref<256x128xbf16, #tpu.memory_space<vmem>>, %arg3: memref<1x128xf32, #tpu.memory_space<vmem>>, %arg4: memref<256x128xbf16, #tpu.memory_space<vmem>>, %arg5: memref<1x128xf32, #tpu.memory_space<vmem>>, %arg6: memref<128x128xbf16, #tpu.memory_space<vmem>>, %arg7: memref<1x128xf32, #tpu.memory_space<vmem>>, %arg8: memref<256x128xbf16, #tpu.memory_space<vmem>>, %arg9: memref<1x128xf32, #tpu.memory_space<vmem>>, %arg10: memref<256x128xbf16, #tpu.memory_space<vmem>>, %arg11: memref<1x128xf32, #tpu.memory_space<vmem>>, %arg12: memref<128x128xbf16, #tpu.memory_space<vmem>>, %arg13: memref<1x128xf32, #tpu.memory_space<vmem>>, %arg14: memref<256x128xbf16, #tpu.memory_space<vmem>>, %arg15: memref<1x128xf32, #tpu.memory_space<vmem>>, %arg16: memref<256x128xbf16, #tpu.memory_space<vmem>>, %arg17: memref<1x128xf32, #tpu.memory_space<vmem>>, %arg18: memref<1x64x128xf32, #tpu.memory_space<vmem>>) attributes {dimension_semantics = [#tpu.dimension_semantics<parallel>], iteration_bounds = array<i64: 2>, scalar_prefetch = 0 : i64, scratch_operands = 0 : i64, tpu.core_type = #tpu.core_type<tc>, window_params = [{transform_indices = @transform_0, window_bounds = array<i64: 1, 64, 128>}, {pipeline_mode = #tpu.pipeline_mode<synchronous>, transform_indices = @transform_1, window_bounds = array<i64: 256, 128>}, {pipeline_mode = #tpu.pipeline_mode<synchronous>, transform_indices = @transform_2, window_bounds = array<i64: 1, 128>}, {pipeline_mode = #tpu.pipeline_mode<synchronous>, transform_indices = @transform_3, window_bounds = array<i64: 256, 128>}, {pipeline_mode = #tpu.pipeline_mode<synchronous>, transform_indices = @transform_4, window_bounds = array<i64: 1, 128>}, {pipeline_mode = #tpu.pipeline_mode<synchronous>, transform_indices = @transform_5, window_bounds = array<i64: 128, 128>}, {pipeline_mode = #tpu.pipeline_mode<synchronous>, transform_indices = @transform_6, window_bounds = array<i64: 1, 128>}, {pipeline_mode = #tpu.pipeline_mode<synchronous>, transform_indices = @transform_7, window_bounds = array<i64: 256, 128>}, {pipeline_mode = #tpu.pipeline_mode<synchronous>, transform_indices = @transform_8, window_bounds = array<i64: 1, 128>}, {pipeline_mode = #tpu.pipeline_mode<synchronous>, transform_indices = @transform_9, window_bounds = array<i64: 256, 128>}, {pipeline_mode = #tpu.pipeline_mode<synchronous>, transform_indices = @transform_10, window_bounds = array<i64: 1, 128>}, {pipeline_mode = #tpu.pipeline_mode<synchronous>, transform_indices = @transform_11, window_bounds = array<i64: 128, 128>}, {pipeline_mode = #tpu.pipeline_mode<synchronous>, transform_indices = @transform_12, window_bounds = array<i64: 1, 128>}, {pipeline_mode = #tpu.pipeline_mode<synchronous>, transform_indices = @transform_13, window_bounds = array<i64: 256, 128>}, {pipeline_mode = #tpu.pipeline_mode<synchronous>, transform_indices = @transform_14, window_bounds = array<i64: 1, 128>}, {pipeline_mode = #tpu.pipeline_mode<synchronous>, transform_indices = @transform_15, window_bounds = array<i64: 256, 128>}, {pipeline_mode = #tpu.pipeline_mode<synchronous>, transform_indices = @transform_16, window_bounds = array<i64: 1, 128>}, {transform_indices = @transform_17, window_bounds = array<i64: 1, 64, 128>}]} {
    %c0 = arith.constant 0 : index
    %c0_0 = arith.constant 0 : index
    %c0_1 = arith.constant 0 : index
    %0 = vector.load %arg1[%c0, %c0_0, %c0_1] : memref<1x64x128xf32, #tpu.memory_space<vmem>>, vector<1x64x128xf32>
    %1 = vector.shape_cast %0 : vector<1x64x128xf32> to vector<64x128xf32>
    %cst = arith.constant 0.000000e+00 : f32
    %2 = vector.broadcast %cst : f32 to vector<1x128xf32>
    %3 = vector.extract_strided_slice %1 {offsets = [0, 0], sizes = [63, 128], strides = [1, 1]} : vector<64x128xf32> to vector<63x128xf32>
    %4 = tpu.concatenate %2, %3 in 0 : vector<1x128xf32>, vector<63x128xf32> -> vector<64x128xf32>
    %5 = tpu.concatenate %4, %1 in 1 : vector<64x128xf32>, vector<64x128xf32> -> vector<64x256xf32>
    %6 = arith.truncf %5 : vector<64x256xf32> to vector<64x256xbf16>
    %c0_2 = arith.constant 0 : index
    %c0_3 = arith.constant 0 : index
    %7 = vector.load %arg2[%c0_2, %c0_3] : memref<256x128xbf16, #tpu.memory_space<vmem>>, vector<256x128xbf16>
    %cst_4 = arith.constant dense<0.000000e+00> : vector<64x128xf32>
    %8 = tpu.matmul %6, %7, %cst_4 {dimension_numbers = #tpu.dot_dimension_numbers<[1], [0], [0], [1], [0, 0, 1, 1], [], []>} : vector<64x256xbf16>, vector<256x128xbf16>, vector<64x128xf32> -> vector<64x128xf32>
    %c0_5 = arith.constant 0 : index
    %c0_6 = arith.constant 0 : index
    %9 = vector.load %arg3[%c0_5, %c0_6] : memref<1x128xf32, #tpu.memory_space<vmem>>, vector<1x128xf32>
    %10 = vector.broadcast %9 : vector<1x128xf32> to vector<64x128xf32>
    %11 = arith.addf %8, %10 : vector<64x128xf32>
    %cst_7 = arith.constant 0.000000e+00 : f32
    %12 = vector.broadcast %cst_7 : f32 to vector<64x128xf32>
    %13 = arith.maximumf %11, %12 : vector<64x128xf32>
    %cst_8 = arith.constant 0.000000e+00 : f32
    %14 = vector.broadcast %cst_8 : f32 to vector<1x128xf32>
    %15 = vector.extract_strided_slice %13 {offsets = [0, 0], sizes = [63, 128], strides = [1, 1]} : vector<64x128xf32> to vector<63x128xf32>
    %16 = tpu.concatenate %14, %15 in 0 : vector<1x128xf32>, vector<63x128xf32> -> vector<64x128xf32>
    %17 = tpu.concatenate %16, %13 in 1 : vector<64x128xf32>, vector<64x128xf32> -> vector<64x256xf32>
    %18 = arith.truncf %17 : vector<64x256xf32> to vector<64x256xbf16>
    %c0_9 = arith.constant 0 : index
    %c0_10 = arith.constant 0 : index
    %19 = vector.load %arg4[%c0_9, %c0_10] : memref<256x128xbf16, #tpu.memory_space<vmem>>, vector<256x128xbf16>
    %cst_11 = arith.constant dense<0.000000e+00> : vector<64x128xf32>
    %20 = tpu.matmul %18, %19, %cst_11 {dimension_numbers = #tpu.dot_dimension_numbers<[1], [0], [0], [1], [0, 0, 1, 1], [], []>} : vector<64x256xbf16>, vector<256x128xbf16>, vector<64x128xf32> -> vector<64x128xf32>
    %c0_12 = arith.constant 0 : index
    %c0_13 = arith.constant 0 : index
    %21 = vector.load %arg5[%c0_12, %c0_13] : memref<1x128xf32, #tpu.memory_space<vmem>>, vector<1x128xf32>
    %22 = vector.broadcast %21 : vector<1x128xf32> to vector<64x128xf32>
    %23 = arith.addf %20, %22 : vector<64x128xf32>
    %cst_14 = arith.constant 0.000000e+00 : f32
    %24 = vector.broadcast %cst_14 : f32 to vector<64x128xf32>
    %25 = arith.maximumf %23, %24 : vector<64x128xf32>
    %26 = arith.truncf %1 : vector<64x128xf32> to vector<64x128xbf16>
    %c0_15 = arith.constant 0 : index
    %c0_16 = arith.constant 0 : index
    %27 = vector.load %arg6[%c0_15, %c0_16] : memref<128x128xbf16, #tpu.memory_space<vmem>>, vector<128x128xbf16>
    %cst_17 = arith.constant dense<0.000000e+00> : vector<64x128xf32>
    %28 = tpu.matmul %26, %27, %cst_17 {dimension_numbers = #tpu.dot_dimension_numbers<[1], [0], [0], [1], [0, 0, 1, 1], [], []>} : vector<64x128xbf16>, vector<128x128xbf16>, vector<64x128xf32> -> vector<64x128xf32>
    %c0_18 = arith.constant 0 : index
    %c0_19 = arith.constant 0 : index
    %29 = vector.load %arg7[%c0_18, %c0_19] : memref<1x128xf32, #tpu.memory_space<vmem>>, vector<1x128xf32>
    %30 = vector.broadcast %29 : vector<1x128xf32> to vector<64x128xf32>
    %31 = arith.addf %28, %30 : vector<64x128xf32>
    %32 = arith.addf %25, %31 : vector<64x128xf32>
    %cst_20 = arith.constant 0.000000e+00 : f32
    %33 = vector.broadcast %cst_20 : f32 to vector<64x128xf32>
    %34 = arith.maximumf %32, %33 : vector<64x128xf32>
    %cst_21 = arith.constant 0.000000e+00 : f32
    %35 = vector.broadcast %cst_21 : f32 to vector<2x128xf32>
    %36 = vector.extract_strided_slice %34 {offsets = [0, 0], sizes = [62, 128], strides = [1, 1]} : vector<64x128xf32> to vector<62x128xf32>
    %37 = tpu.concatenate %35, %36 in 0 : vector<2x128xf32>, vector<62x128xf32> -> vector<64x128xf32>
    %38 = tpu.concatenate %37, %34 in 1 : vector<64x128xf32>, vector<64x128xf32> -> vector<64x256xf32>
    %39 = arith.truncf %38 : vector<64x256xf32> to vector<64x256xbf16>
    %c0_22 = arith.constant 0 : index
    %c0_23 = arith.constant 0 : index
    %40 = vector.load %arg8[%c0_22, %c0_23] : memref<256x128xbf16, #tpu.memory_space<vmem>>, vector<256x128xbf16>
    %cst_24 = arith.constant dense<0.000000e+00> : vector<64x128xf32>
    %41 = tpu.matmul %39, %40, %cst_24 {dimension_numbers = #tpu.dot_dimension_numbers<[1], [0], [0], [1], [0, 0, 1, 1], [], []>} : vector<64x256xbf16>, vector<256x128xbf16>, vector<64x128xf32> -> vector<64x128xf32>
    %c0_25 = arith.constant 0 : index
    %c0_26 = arith.constant 0 : index
    %42 = vector.load %arg9[%c0_25, %c0_26] : memref<1x128xf32, #tpu.memory_space<vmem>>, vector<1x128xf32>
    %43 = vector.broadcast %42 : vector<1x128xf32> to vector<64x128xf32>
    %44 = arith.addf %41, %43 : vector<64x128xf32>
    %cst_27 = arith.constant 0.000000e+00 : f32
    %45 = vector.broadcast %cst_27 : f32 to vector<64x128xf32>
    %46 = arith.maximumf %44, %45 : vector<64x128xf32>
    %cst_28 = arith.constant 0.000000e+00 : f32
    %47 = vector.broadcast %cst_28 : f32 to vector<2x128xf32>
    %48 = vector.extract_strided_slice %46 {offsets = [0, 0], sizes = [62, 128], strides = [1, 1]} : vector<64x128xf32> to vector<62x128xf32>
    %49 = tpu.concatenate %47, %48 in 0 : vector<2x128xf32>, vector<62x128xf32> -> vector<64x128xf32>
    %50 = tpu.concatenate %49, %46 in 1 : vector<64x128xf32>, vector<64x128xf32> -> vector<64x256xf32>
    %51 = arith.truncf %50 : vector<64x256xf32> to vector<64x256xbf16>
    %c0_29 = arith.constant 0 : index
    %c0_30 = arith.constant 0 : index
    %52 = vector.load %arg10[%c0_29, %c0_30] : memref<256x128xbf16, #tpu.memory_space<vmem>>, vector<256x128xbf16>
    %cst_31 = arith.constant dense<0.000000e+00> : vector<64x128xf32>
    %53 = tpu.matmul %51, %52, %cst_31 {dimension_numbers = #tpu.dot_dimension_numbers<[1], [0], [0], [1], [0, 0, 1, 1], [], []>} : vector<64x256xbf16>, vector<256x128xbf16>, vector<64x128xf32> -> vector<64x128xf32>
    %c0_32 = arith.constant 0 : index
    %c0_33 = arith.constant 0 : index
    %54 = vector.load %arg11[%c0_32, %c0_33] : memref<1x128xf32, #tpu.memory_space<vmem>>, vector<1x128xf32>
    %55 = vector.broadcast %54 : vector<1x128xf32> to vector<64x128xf32>
    %56 = arith.addf %53, %55 : vector<64x128xf32>
    %cst_34 = arith.constant 0.000000e+00 : f32
    %57 = vector.broadcast %cst_34 : f32 to vector<64x128xf32>
    %58 = arith.maximumf %56, %57 : vector<64x128xf32>
    %59 = arith.truncf %34 : vector<64x128xf32> to vector<64x128xbf16>
    %c0_35 = arith.constant 0 : index
    %c0_36 = arith.constant 0 : index
    %60 = vector.load %arg12[%c0_35, %c0_36] : memref<128x128xbf16, #tpu.memory_space<vmem>>, vector<128x128xbf16>
    %cst_37 = arith.constant dense<0.000000e+00> : vector<64x128xf32>
    %61 = tpu.matmul %59, %60, %cst_37 {dimension_numbers = #tpu.dot_dimension_numbers<[1], [0], [0], [1], [0, 0, 1, 1], [], []>} : vector<64x128xbf16>, vector<128x128xbf16>, vector<64x128xf32> -> vector<64x128xf32>
    %c0_38 = arith.constant 0 : index
    %c0_39 = arith.constant 0 : index
    %62 = vector.load %arg13[%c0_38, %c0_39] : memref<1x128xf32, #tpu.memory_space<vmem>>, vector<1x128xf32>
    %63 = vector.broadcast %62 : vector<1x128xf32> to vector<64x128xf32>
    %64 = arith.addf %61, %63 : vector<64x128xf32>
    %65 = arith.addf %58, %64 : vector<64x128xf32>
    %cst_40 = arith.constant 0.000000e+00 : f32
    %66 = vector.broadcast %cst_40 : f32 to vector<64x128xf32>
    %67 = arith.maximumf %65, %66 : vector<64x128xf32>
    %cst_41 = arith.constant 0.000000e+00 : f32
    %68 = vector.broadcast %cst_41 : f32 to vector<4x128xf32>
    %69 = vector.extract_strided_slice %67 {offsets = [0, 0], sizes = [60, 128], strides = [1, 1]} : vector<64x128xf32> to vector<60x128xf32>
    %70 = tpu.concatenate %68, %69 in 0 : vector<4x128xf32>, vector<60x128xf32> -> vector<64x128xf32>
    %71 = tpu.concatenate %70, %67 in 1 : vector<64x128xf32>, vector<64x128xf32> -> vector<64x256xf32>
    %72 = arith.truncf %71 : vector<64x256xf32> to vector<64x256xbf16>
    %c0_42 = arith.constant 0 : index
    %c0_43 = arith.constant 0 : index
    %73 = vector.load %arg14[%c0_42, %c0_43] : memref<256x128xbf16, #tpu.memory_space<vmem>>, vector<256x128xbf16>
    %cst_44 = arith.constant dense<0.000000e+00> : vector<64x128xf32>
    %74 = tpu.matmul %72, %73, %cst_44 {dimension_numbers = #tpu.dot_dimension_numbers<[1], [0], [0], [1], [0, 0, 1, 1], [], []>} : vector<64x256xbf16>, vector<256x128xbf16>, vector<64x128xf32> -> vector<64x128xf32>
    %c0_45 = arith.constant 0 : index
    %c0_46 = arith.constant 0 : index
    %75 = vector.load %arg15[%c0_45, %c0_46] : memref<1x128xf32, #tpu.memory_space<vmem>>, vector<1x128xf32>
    %76 = vector.broadcast %75 : vector<1x128xf32> to vector<64x128xf32>
    %77 = arith.addf %74, %76 : vector<64x128xf32>
    %cst_47 = arith.constant 0.000000e+00 : f32
    %78 = vector.broadcast %cst_47 : f32 to vector<64x128xf32>
    %79 = arith.maximumf %77, %78 : vector<64x128xf32>
    %cst_48 = arith.constant 0.000000e+00 : f32
    %80 = vector.broadcast %cst_48 : f32 to vector<4x128xf32>
    %81 = vector.extract_strided_slice %79 {offsets = [0, 0], sizes = [60, 128], strides = [1, 1]} : vector<64x128xf32> to vector<60x128xf32>
    %82 = tpu.concatenate %80, %81 in 0 : vector<4x128xf32>, vector<60x128xf32> -> vector<64x128xf32>
    %83 = tpu.concatenate %82, %79 in 1 : vector<64x128xf32>, vector<64x128xf32> -> vector<64x256xf32>
    %84 = arith.truncf %83 : vector<64x256xf32> to vector<64x256xbf16>
    %c0_49 = arith.constant 0 : index
    %c0_50 = arith.constant 0 : index
    %85 = vector.load %arg16[%c0_49, %c0_50] : memref<256x128xbf16, #tpu.memory_space<vmem>>, vector<256x128xbf16>
    %cst_51 = arith.constant dense<0.000000e+00> : vector<64x128xf32>
    %86 = tpu.matmul %84, %85, %cst_51 {dimension_numbers = #tpu.dot_dimension_numbers<[1], [0], [0], [1], [0, 0, 1, 1], [], []>} : vector<64x256xbf16>, vector<256x128xbf16>, vector<64x128xf32> -> vector<64x128xf32>
    %c0_52 = arith.constant 0 : index
    %c0_53 = arith.constant 0 : index
    %87 = vector.load %arg17[%c0_52, %c0_53] : memref<1x128xf32, #tpu.memory_space<vmem>>, vector<1x128xf32>
    %88 = vector.broadcast %87 : vector<1x128xf32> to vector<64x128xf32>
    %89 = arith.addf %86, %88 : vector<64x128xf32>
    %cst_54 = arith.constant 0.000000e+00 : f32
    %90 = vector.broadcast %cst_54 : f32 to vector<64x128xf32>
    %91 = arith.maximumf %89, %90 : vector<64x128xf32>
    %92 = arith.addf %91, %67 : vector<64x128xf32>
    %cst_55 = arith.constant 0.000000e+00 : f32
    %93 = vector.broadcast %cst_55 : f32 to vector<64x128xf32>
    %94 = arith.maximumf %92, %93 : vector<64x128xf32>
    %c0_56 = arith.constant 0 : index
    %c0_57 = arith.constant 0 : index
    %c0_58 = arith.constant 0 : index
    %95 = vector.load %arg18[%c0_56, %c0_57, %c0_58] : memref<1x64x128xf32, #tpu.memory_space<vmem>>, vector<1x64x128xf32>
    %96 = vector.shape_cast %95 : vector<1x64x128xf32> to vector<64x128xf32>
    %97 = vector.shape_cast %94 : vector<64x128xf32> to vector<1x64x128xf32>
    tpu.vector_store %arg18[%c0_56, %c0_57, %c0_58], %97 {strides = array<i32>} : memref<1x64x128xf32, #tpu.memory_space<vmem>>, vector<1x64x128xf32>,
    return
  }
  func.func @transform_0(%arg0: i32) -> (i32, i32, i32) {
    %c0_i32 = arith.constant 0 : i32
    %c0_i32_0 = arith.constant 0 : i32
    %c0_i32_1 = arith.constant 0 : i32
    return %arg0, %c0_i32, %c0_i32_0 : i32, i32, i32
  }
  func.func @transform_1(%arg0: i32) -> (i32, i32) {
    %c0_i32 = arith.constant 0 : i32
    %c0_i32_0 = arith.constant 0 : i32
    %c0_i32_1 = arith.constant 0 : i32
    return %c0_i32, %c0_i32_0 : i32, i32
  }
  func.func @transform_2(%arg0: i32) -> (i32, i32) {
    %c0_i32 = arith.constant 0 : i32
    %c0_i32_0 = arith.constant 0 : i32
    %c0_i32_1 = arith.constant 0 : i32
    return %c0_i32, %c0_i32_0 : i32, i32
  }
  func.func @transform_3(%arg0: i32) -> (i32, i32) {
    %c0_i32 = arith.constant 0 : i32
    %c0_i32_0 = arith.constant 0 : i32
    %c0_i32_1 = arith.constant 0 : i32
    return %c0_i32, %c0_i32_0 : i32, i32
  }
  func.func @transform_4(%arg0: i32) -> (i32, i32) {
    %c0_i32 = arith.constant 0 : i32
    %c0_i32_0 = arith.constant 0 : i32
    %c0_i32_1 = arith.constant 0 : i32
    return %c0_i32, %c0_i32_0 : i32, i32
  }
  func.func @transform_5(%arg0: i32) -> (i32, i32) {
    %c0_i32 = arith.constant 0 : i32
    %c0_i32_0 = arith.constant 0 : i32
    %c0_i32_1 = arith.constant 0 : i32
    return %c0_i32, %c0_i32_0 : i32, i32
  }
  func.func @transform_6(%arg0: i32) -> (i32, i32) {
    %c0_i32 = arith.constant 0 : i32
    %c0_i32_0 = arith.constant 0 : i32
    %c0_i32_1 = arith.constant 0 : i32
    return %c0_i32, %c0_i32_0 : i32, i32
  }
  func.func @transform_7(%arg0: i32) -> (i32, i32) {
    %c0_i32 = arith.constant 0 : i32
    %c0_i32_0 = arith.constant 0 : i32
    %c0_i32_1 = arith.constant 0 : i32
    return %c0_i32, %c0_i32_0 : i32, i32
  }
  func.func @transform_8(%arg0: i32) -> (i32, i32) {
    %c0_i32 = arith.constant 0 : i32
    %c0_i32_0 = arith.constant 0 : i32
    %c0_i32_1 = arith.constant 0 : i32
    return %c0_i32, %c0_i32_0 : i32, i32
  }
  func.func @transform_9(%arg0: i32) -> (i32, i32) {
    %c0_i32 = arith.constant 0 : i32
    %c0_i32_0 = arith.constant 0 : i32
    %c0_i32_1 = arith.constant 0 : i32
    return %c0_i32, %c0_i32_0 : i32, i32
  }
  func.func @transform_10(%arg0: i32) -> (i32, i32) {
    %c0_i32 = arith.constant 0 : i32
    %c0_i32_0 = arith.constant 0 : i32
    %c0_i32_1 = arith.constant 0 : i32
    return %c0_i32, %c0_i32_0 : i32, i32
  }
  func.func @transform_11(%arg0: i32) -> (i32, i32) {
    %c0_i32 = arith.constant 0 : i32
    %c0_i32_0 = arith.constant 0 : i32
    %c0_i32_1 = arith.constant 0 : i32
    return %c0_i32, %c0_i32_0 : i32, i32
  }
  func.func @transform_12(%arg0: i32) -> (i32, i32) {
    %c0_i32 = arith.constant 0 : i32
    %c0_i32_0 = arith.constant 0 : i32
    %c0_i32_1 = arith.constant 0 : i32
    return %c0_i32, %c0_i32_0 : i32, i32
  }
  func.func @transform_13(%arg0: i32) -> (i32, i32) {
    %c0_i32 = arith.constant 0 : i32
    %c0_i32_0 = arith.constant 0 : i32
    %c0_i32_1 = arith.constant 0 : i32
    return %c0_i32, %c0_i32_0 : i32, i32
  }
  func.func @transform_14(%arg0: i32) -> (i32, i32) {
    %c0_i32 = arith.constant 0 : i32
    %c0_i32_0 = arith.constant 0 : i32
    %c0_i32_1 = arith.constant 0 : i32
    return %c0_i32, %c0_i32_0 : i32, i32
  }
  func.func @transform_15(%arg0: i32) -> (i32, i32) {
    %c0_i32 = arith.constant 0 : i32
    %c0_i32_0 = arith.constant 0 : i32
    %c0_i32_1 = arith.constant 0 : i32
    return %c0_i32, %c0_i32_0 : i32, i32
  }
  func.func @transform_16(%arg0: i32) -> (i32, i32) {
    %c0_i32 = arith.constant 0 : i32
    %c0_i32_0 = arith.constant 0 : i32
    %c0_i32_1 = arith.constant 0 : i32
    return %c0_i32, %c0_i32_0 : i32, i32
  }
  func.func @transform_17(%arg0: i32) -> (i32, i32, i32) {
    %c0_i32 = arith.constant 0 : i32
    %c0_i32_0 = arith.constant 0 : i32
    %c0_i32_1 = arith.constant 0 : i32
    return %arg0, %c0_i32, %c0_i32_0 : i32, i32, i32
  }
}

</mosaic_0001>

<bundles_post_ra>
// kernel: tcn_forward.1
= control target key start
LH: loop header
LB: loop body
LE: loop exit
PB: predicated region body
PF: predicated region fallthrough
CT: control target
= control target key end

     0   :  { %s3945_s0 = inlined_call_operand.vmem [shape: f32[2,64,128], index: 0, kind: input, shape index: {}]   ;;  %s3946_s1 = inlined_call_operand.vmem [shape: bf16[256,128], index: 1, kind: input, shape index: {}]   ;;  %s3947_s2 = inlined_call_operand.vmem [shape: f32[1,128], index: 2, kind: input, shape index: {}]   ;;  %s3948_s3 = inlined_call_operand.vmem [shape: bf16[256,128], index: 3, kind: input, shape index: {}]   ;;  %s3949_s4 = inlined_call_operand.vmem [shape: f32[1,128], index: 4, kind: input, shape index: {}]   ;;  %s3950_s5 = inlined_call_operand.vmem [shape: bf16[128,128], index: 5, kind: input, shape index: {}]   ;;  %s3951_s6 = inlined_call_operand.vmem [shape: f32[1,128], index: 6, kind: input, shape index: {}]   ;;  %s3952_s7 = inlined_call_operand.vmem [shape: bf16[256,128], index: 7, kind: input, shape index: {}]   ;;  %s3953_s8 = inlined_call_operand.vmem [shape: f32[1,128], index: 8, kind: input, shape index: {}]   ;;  %s3954_s9 = inlined_call_operand.vmem [shape: bf16[256,128], index: 9, kind: input, shape index: {}]   ;;  %s3955_s10 = inlined_call_operand.vmem [shape: f32[1,128], index: 10, kind: input, shape index: {}]   ;;  %s3956_s11 = inlined_call_operand.vmem [shape: bf16[128,128], index: 11, kind: input, shape index: {}]   ;;  %s3957_s12 = inlined_call_operand.vmem [shape: f32[1,128], index: 12, kind: input, shape index: {}]   ;;  %s3958_s13 = inlined_call_operand.vmem [shape: bf16[256,128], index: 13, kind: input, shape index: {}]   ;;  %s3959_s14 = inlined_call_operand.vmem [shape: f32[1,128], index: 14, kind: input, shape index: {}]   ;;  %s3960_s15 = inlined_call_operand.vmem [shape: bf16[256,128], index: 15, kind: input, shape index: {}]   ;;  %s3961_s16 = inlined_call_operand.vmem [shape: f32[1,128], index: 16, kind: input, shape index: {}]   ;;  %s3962_s17 = inlined_call_operand.hbm [shape: f32[2,64,128], index: 17, kind: output, shape index: {}]  }
   0x1   :  { %3971 = sst [smem:[#allocation11_spill]] %s3945_s0 }
   0x2   :  { %3972 = sst [smem:[#allocation12_spill]] %s3946_s1 }
   0x3   :  { %3973 = sst [smem:[#allocation13_spill]] %s3962_s17 }
   0x4   :  { %22 = vsyncpa [#allocation3], 0 }
   0x5   :  { %24 = vsyncpa [#allocation3 + $0x1], 0  ;;  %s3233_s24 = smov 0   ;;  %s3235_s25 = smov 0  }
   0x6   :  { %s3237_s26 = smov 0   ;;  %s3239_s27 = smov 0  }
   0x7 LB: > { %3974 = sst [smem:[#allocation5_spill]] %s3125_s24  ;;  %s3254_s28 = sadd.s32 4294967295, %s3137_s27   ;;  %s3137_s27 = sphi %s3239_s27, %s3995_s27   ;;  %s3133_s26 = sphi %s3237_s26, %s3997_s26   ;;  %s3129_s25 = sphi %s3235_s25, %s3999_s25   ;;  %s3125_s24 = sphi %s3233_s24, %s3998_s24  }
   0x8   : > { %3975 = sst [smem:[#allocation6_spill]] %s3133_s26  ;;  %s2451_s29 = sadd.s32 4294967294, %s3137_s27  }
   0x9   : > { %3976 = sst [smem:[#allocation7_spill]] %s3137_s27  ;;  %s3258_s0 = sadd.s32 1, %s3137_s27  }
   0xa   : > { %3977 = sst [smem:[#allocation8_spill]] %s3258_s0  ;;  %s399_s30 = sadd.s32 1, %s3133_s26 }
   0xb   : > { %s396_s18 = ssub.s32 %s3137_s27, %s3258_s0  ;;  %p409_p0 = scmp.ne.s32.totalorder %s3133_s26, %s3129_s25 }
   0xc   : > { %p397_p1 = scmp.eq.s32.totalorder %s396_s18, 0  ;;  %p410_p2 = scmp.eq.s32.totalorder %s3254_s28, 1 }
   0xd   : > { %p415_p3 = scmp.ne.s32.totalorder %s3129_s25, %s3125_s24  ;;  %p416_p4 = scmp.eq.s32.totalorder %s2451_s29, 1 }
   0xe   : > { %s3269_s19 = scalar_select %p397_p1, %s3133_s26, %s399_s30  }
   0xf   : > { %p3271_p5 = por %p410_p2, %p409_p0  ;;  %p3275_p6 = por %p416_p4, %p415_p3 }
  0x10   : > { %3978 = sst [smem:[#allocation9_spill]] %s3269_s19  ;;  %p2454_p7 = scmp.ge.s32.totalorder %s3137_s27, 1 }
  0x11   : > { %s3980_s20 = scalar_select %p3275_p6, 1, 0 }
  0x12   : > { %p490_p8 = scmp.lt.s32.totalorder %s3137_s27, 3 }
  0x13   : > { %3981 = sst [smem:[#allocation10_spill]] %s3980_s20 }
  0x14   : > { %p491_p9 = pnand %p2454_p7, %p490_p8 }
  0x15   : > { %s3982_s23 = sld [smem:[#allocation12_spill]] (!%p491_p9)  ;;  %p542_p10 = scmp.lt.s32.totalorder (!%p491_p9), %s3254_s28, 1  ;;  %vm564_vm0 = vcmask (!%p491_p9), 1040384   ;;  %v2979_v17 = vld [vmem:[%s3948_s3 + $0x40] sm:$0xff] (!%p491_p9)   ;;  %vm3139_vm2 = vmmov (!%p491_p9), 1   ;;  %v2982_v25 = vld [vmem:[%s3948_s3 + $0x48] sm:$0xff] (!%p491_p9)  }
  0x16   : > { %494 = sbr.rel (%p491_p9) target bundleno = 1462 (0x5b6), region = 88  ;;  %s3983_s29 = sld [smem:[#allocation11_spill]] (!%p491_p9)  ;;  %vm2475_vm1 = vmneg (!%p491_p9), %vm564_vm0  ;;  %v2980_v20 = vld [vmem:[%s3948_s3] sm:$0xff] (!%p491_p9)   ;;  %2649 = vmatprep.subr.bf16.mxu1 (!%p491_p9), %v2979_v17  ;;  %v2983_v28 = vld [vmem:[%s3948_s3 + $0x8] sm:$0xff] (!%p491_p9)   ;;  %vm1213_vm4 = vcmask (!%p491_p9), 1041408   ;;  %vm1862_vm7 = vcmask (!%p491_p9), 1043456  }
  0x17   : > { %vm3346_vm3 = vmpackc.low (!%p491_p9), %vm3139_vm2, %vm2475_vm1  ;;  %2650 = vmatpush3.bf16.msra.mxu1 (!%p491_p9), %v2980_v20  ;;  %v2981_v30 = vld [vmem:[%s3950_s5] sm:$0xff] (!%p491_p9)   ;;  %v2985_v33 = vld [vmem:[%s3948_s3 + $0x50] sm:$0xff] (!%p491_p9)   ;;  %s539_s21 = sand.u32 (!%p491_p9), 1, %s3129_s25   ;;  %s3990_s26 = sld [smem:[#allocation13_spill]] (!%p491_p9) }
  0x18   : > { %2651 = vmatprep.subr.bf16.mxu1 (!%p491_p9), %v2982_v25  ;;  %v2986_v35 = vld [vmem:[%s3948_s3 + $0x10] sm:$0xff] (!%p491_p9)   ;;  %v2988_v40 = vld [vmem:[%s3948_s3 + $0x58] sm:$0xff] (!%p491_p9)   ;;  %v2984_v43 = vld [vmem:[%s3950_s5 + $0x8] sm:$0xff] (!%p491_p9)   ;;  %s2455_s22 = sshll.u32 (!%p491_p9), %s539_s21, 6  ;;  %s3904_s27 = scalar_lea.sflag (!%p491_p9), [#allocation3], %s539_s21 }
  0x19   : > { %v2989_v45 = vld [vmem:[%s3948_s3 + $0x18] sm:$0xff] (!%p491_p9)   ;;  %v2991_v47 = vld [vmem:[%s3948_s3 + $0x60] sm:$0xff] (!%p491_p9)   ;;  %v2987_v48 = vld [vmem:[%s3950_s5 + $0x10] sm:$0xff] (!%p491_p9)   ;;  %s3140_s0 = smov (!%p491_p9), [#allocation2]  }
  0x1a   : > { %v2990_v52 = vld [vmem:[%s3950_s5 + $0x18] sm:$0xff] (!%p491_p9)   ;;  %v2992_v61 = vld [vmem:[%s3948_s3 + $0x20] sm:$0xff] (!%p491_p9)   ;;  %v2994_v63 = vld [vmem:[%s3948_s3 + $0x68] sm:$0xff] (!%p491_p9)  }
  0x1b   : > { %v2963_v0 = vld [vmem:[%s3982_s23 + $0x40] sm:$0xff] (!%p491_p9)   ;;  %v2965_v2 = vld [vmem:[%s3982_s23 + $0x48] sm:$0xff] (!%p491_p9)   ;;  %v2967_v4 = vld [vmem:[%s3982_s23 + $0x50] sm:$0xff] (!%p491_p9)   ;;  %2652 = vmatpush3.bf16.msra.mxu1 (!%p491_p9), %v2983_v28 }
  0x1c   : > { %v2964_v1 = vld [vmem:[%s3982_s23] sm:$0xff] (!%p491_p9)   ;;  %2609 = vmatprep.subr.bf16.mxu0 (!%p491_p9), %v2963_v0  ;;  %v2966_v3 = vld [vmem:[%s3982_s23 + $0x8] sm:$0xff] (!%p491_p9)   ;;  %v2968_v5 = vld [vmem:[%s3982_s23 + $0x10] sm:$0xff] (!%p491_p9)   ;;  %2653 = vmatprep.subr.bf16.mxu1 (!%p491_p9), %v2985_v33 }
  0x1d   : > { %2610 = vmatpush3.bf16.msra.mxu0 %v2964_v1  ;;  %s543_s20 = scalar_select %p542_p10, %s3254_s28, 1  ;;  %v2969_v6 = vld [vmem:[%s3982_s23 + $0x58] sm:$0xff]   ;;  %v2971_v8 = vld [vmem:[%s3982_s23 + $0x60] sm:$0xff]   ;;  %v2973_v10 = vld [vmem:[%s3982_s23 + $0x68] sm:$0xff]  }
  0x1e   : > { %2611 = vmatprep.subr.bf16.mxu0 %v2965_v2  ;;  %v2970_v7 = vld [vmem:[%s3982_s23 + $0x18] sm:$0xff]   ;;  %v2972_v9 = vld [vmem:[%s3982_s23 + $0x20] sm:$0xff]   ;;  %v2974_v14 = vld [vmem:[%s3982_s23 + $0x28] sm:$0xff]   ;;  %s3991_s17 = smov %s3990_s26 }
  0x1f   : > { %s2607_s24 = sshll.u32 %s543_s20, 6  ;;  %v2975_v15 = vld [vmem:[%s3982_s23 + $0x70] sm:$0xff]   ;;  %v2977_v18 = vld [vmem:[%s3982_s23 + $0x78] sm:$0xff]   ;;  %2654 = vmatpush3.bf16.msra.mxu1 %v2986_v35  ;;  %v2993_v62 = vld [vmem:[%s3950_s5 + $0x20] sm:$0xff]  }
  0x20   : > { %s3313_s30 = scalar_lea.vmem %s3983_s29, %s2607_s24  ;;  %v2976_v16 = vld [vmem:[%s3982_s23 + $0x30] sm:$0xff]   ;;  %v2978_v26 = vld [vmem:[%s3982_s23 + $0x38] sm:$0xff]   ;;  %2655 = vmatprep.subr.bf16.mxu1 %v2988_v40  ;;  %v2995_v0 = vld [vmem:[%s3948_s3 + $0x28] sm:$0xff]   ;;  %s3877_s29 = scalar_lea.vmem [#allocation2], %s2455_s22 }
  0x21   : > { %2612 = vmatpush3.bf16.msra.mxu0 %v2966_v3  ;;  %v548_v11 = vld [vmem:[%s3313_s30] sm:$0xff]  ;;  %v549_v12 = vld [vmem:[%s3313_s30 + $0x8] sm:$0xff]  ;;  %v550_v23 = vld [vmem:[%s3313_s30 + $0x10] sm:$0xff]  ;;  %s2389_s19 = sshll.u32 %s3877_s29, 4  ;;  %s3079_s22 = sshll.u32 %s3140_s0, 4  ;;  %s3898_s19 = int_to_ptr.vmem [resolvable:$true] %s2389_s19  ;;  %s3080_s22 = int_to_ptr.vmem [resolvable:$false] %s3079_s22 }
  0x22   : > { %2613 = vmatprep.subr.bf16.mxu0 %v2967_v4  ;;  %v3323_v13 = vpack.c.bf16 %v549_v12, %v548_v11  ;;  %v565_v19 = vrot.slane %v548_v11, 7  ;;  %v566_v21 = vrot.slane %v549_v12, 7  ;;  %v551_v24 = vld [vmem:[%s3313_s30 + $0x18] sm:$0xff]  ;;  %v552_v27 = vld [vmem:[%s3313_s30 + $0x20] sm:$0xff]  ;;  %v553_v29 = vld [vmem:[%s3313_s30 + $0x28] sm:$0xff]  ;;  %v568_v34 = vrot.slane %v550_v23, 7  ;;  %p3082_p0 = scmp.lt.s32.totalorder %s3898_s19, %s3080_s22 }
  0x23   : > { %v554_v32 = vld [vmem:[%s3313_s30 + $0x30] sm:$0xff]  ;;  %v570_v36 = vrot.slane %v551_v24, 7  ;;  %v555_v37 = vld [vmem:[%s3313_s30 + $0x38] sm:$0xff]  ;;  %v572_v39 = vrot.slane %v552_v27, 7  ;;  %v3378_v41 = vpack.c.bf16 %v551_v24, %v550_v23  ;;  %v574_v42 = vrot.slane %v553_v29, 7  ;;  %2656 = vmatpush3.bf16.msra.mxu1 %v2989_v45  ;;  %v2996_v1 = vld [vmem:[%s3950_s5 + $0x28] sm:$0xff]  }
  0x24   : > { %764 = vmatprep.mubr.bf16.mxu0 %v3323_v13  ;;  %v567_v31 = vsel %vm564_vm0, %v565_v19, %v566_v21  ;;  %v576_v44 = vrot.slane %v554_v32, 7  ;;  %v578_v46 = vrot.slane %v555_v37, 7  ;;  %v569_v49 = vsel %vm564_vm0, %v566_v21, %v568_v34  ;;  %2657 = vmatprep.subr.bf16.mxu1 %v2991_v47  ;;  %v2997_v2 = vld [vmem:[%s3948_s3 + $0x70] sm:$0xff]   ;;  %v3445_v11 = vld [vmem:[%s3947_s2] ss:$0 sm:$0xff]  ;;  %v3006_v40 = vld [vmem:[%s3952_s7 + $0x8] sm:$0xff]  }
  0x25   : > { %2614 = vmatpush3.bf16.msra.mxu0 %v2968_v5  ;;  %v2477_v38 = vpack.c.bf16 %v567_v31, %v565_v19  ;;  %v571_v50 = vsel %vm564_vm0, %v568_v34, %v570_v36  ;;  %v594_v53 = vpack.c.bf16 %v553_v29, %v552_v27  ;;  %v573_v54 = vsel %vm564_vm0, %v570_v36, %v572_v39  ;;  %v2998_v3 = vld [vmem:[%s3948_s3 + $0x30] sm:$0xff]   ;;  %v3000_v5 = vld [vmem:[%s3948_s3 + $0x78] sm:$0xff]   ;;  %v3005_v34 = vld [vmem:[%s3952_s7 + $0x48] sm:$0xff]   ;;  %s2608_s30 = sshll.u32 %s3254_s28, 10  ;;  %s3075_s28 = scalar_lea.vmem %s3898_s19, 1024 }
  0x26   : > { %2615 = vmatprep.subr.bf16.mxu0 %v2969_v6  ;;  %v591_v51 = vpack.c.bf16 %v571_v50, %v569_v49  ;;  %v575_v55 = vsel %vm564_vm0, %v572_v39, %v574_v42  ;;  %v596_v57 = vpack.c.bf16 %v555_v37, %v554_v32  ;;  %v577_v58 = vsel %vm564_vm0, %v574_v42, %v576_v44  ;;  %v2999_v4 = vld [vmem:[%s3950_s5 + $0x30] sm:$0xff]   ;;  %v3001_v6 = vld [vmem:[%s3948_s3 + $0x38] sm:$0xff]   ;;  %v3004_v32 = vld [vmem:[%s3952_s7] sm:$0xff]   ;;  %s3896_s24 = scalar_lea.hbm %s3990_s26, %s2608_s30  ;;  %p3076_p11 = scmp.ne.s32.totalorder %s3898_s19, %s3075_s28 }
  0x27   : > { %v593_v56 = vpack.c.bf16 %v575_v55, %v573_v54  ;;  %v579_v59 = vsel %vm564_vm0, %v576_v44, %v578_v46  ;;  %2658 = vmatpush3.bf16.msra.mxu1 %v2992_v61  ;;  %v3007_v42 = vld [vmem:[%s3952_s7 + $0x50] sm:$0xff]   ;;  %vm2526_vm5 = vmneg %vm1213_vm4  ;;  %s3081_s30 = scalar_lea.vmem %s3080_s22, 2048 }
  0x28   : > { %v595_v60 = vpack.c.bf16 %v579_v59, %v577_v58  ;;  %2659 = vmatprep.subr.bf16.mxu1 %v2994_v63  ;;  %v3010_v59 = vld [vmem:[%s3952_s7 + $0x18] sm:$0xff]   ;;  %vm3576_vm6 = vmpackc.low %vm3139_vm2, %vm2526_vm5  ;;  %p3077_p12 = pnand %p3076_p11, %p3271_p5  ;;  %p3083_p1 = scmp.lt.s32.totalorder %s3081_s30, %s3075_s28 }
  0x29   : > { %2616 = vmatpush3.bf16.msra.mxu0 %v2970_v7  ;;  %v3002_v7 = vld [vmem:[%s3950_s5 + $0x38] sm:$0xff]   ;;  %vm2577_vm8 = vmneg %vm1862_vm7 }
  0x2a   : > { %2617 = vmatprep.subr.bf16.mxu0 %v2971_v8  ;;  %v3003_v8 = vld [vmem:[%s3952_s7 + $0x40] sm:$0xff]   ;;  %vm3785_vm9 = vmpackc.low %vm3139_vm2, %vm2577_vm8  ;;  %p3078_p13 = pneg %p3077_p12  ;;  %p3084_p2 = por %p3083_p1, %p3082_p0 }
  0x2b   : > { %2660 = vmatpush3.bf16.msra.mxu1 %v2995_v0 }
  0x2c   : > { %2661 = vmatprep.subr.bf16.mxu1 %v2997_v2  ;;  %p3085_p3 = pnand %p3084_p2, %p3078_p13 }
  0x2d   : > { %2618 = vmatpush3.bf16.msra.mxu0 %v2972_v9 }
  0x2e   : > { %2619 = vmatprep.subr.bf16.mxu0 %v2973_v10 }
  0x2f   : > { %2662 = vmatpush3.bf16.msra.mxu1 %v2998_v3 }
  0x30   : > { %2663 = vmatprep.subr.bf16.mxu1 %v3000_v5 }
  0x31   : > { %2620 = vmatpush3.bf16.msra.mxu0 %v2974_v14 }
  0x32   : > { %2621 = vmatprep.subr.bf16.mxu0 %v2975_v15 }
  0x33   : > { %2664 = vmatpush3.bf16.msra.mxu1 %v3001_v6 }
  0x34   : > { %2701 = vmatprep.subr.bf16.mxu1 %v3003_v8 }
  0x35   : > { %2622 = vmatpush3.bf16.msra.mxu0 %v2976_v16 }
  0x36   : > { %2623 = vmatprep.subr.bf16.mxu0 %v2977_v18 }
  0x39   : > { %2624 = vmatpush3.bf16.msra.mxu0 %v2978_v26 }
  0x3a   : > { %2873 = vmatprep.subr.bf16.mxu0 %v2981_v30 }
  0x3c   : > { %2478 = vmatmul.mubr.msk.bf16.vlgmr.msra.gmra.mrb[0].mxu0 %vm3346_vm3, %v2477_v38 }
  0x3d   : > { %772 = vmatprep.mubr.bf16.mxu0 %v3378_v41  ;;  %2874 = vmatpush3.bf16.msra.mxu0 %v2981_v30 }
  0x3e   : > { %2875 = vmatprep.subr.bf16.mxu0 %v2984_v43 }
  0x41   : > { %2876 = vmatpush3.bf16.msra.mxu0 %v2984_v43 }
  0x42   : > { %2877 = vmatprep.subr.bf16.mxu0 %v2987_v48 }
  0x44   : > { %773 = vmatmul.mubr.bf16.gmra.mrb[4].mxu0 %v591_v51  ;;  %v3008_v51 = vld [vmem:[%s3952_s7 + $0x10] sm:$0xff]  }
  0x45   : > { %780 = vmatprep.mubr.bf16.mxu0 %v594_v53  ;;  %2878 = vmatpush3.bf16.msra.mxu0 %v2987_v48 }
  0x46   : > { %2879 = vmatprep.subr.bf16.mxu0 %v2990_v52 }
  0x49   : > { %2880 = vmatpush3.bf16.msra.mxu0 %v2990_v52 }
  0x4a   : > { %2881 = vmatprep.subr.bf16.mxu0 %v2993_v62 }
  0x4c   : > { %781 = vmatmul.mubr.bf16.gmra.mrb[8].mxu0 %v593_v56 }
  0x4d   : > { %788 = vmatprep.mubr.bf16.mxu0 %v596_v57  ;;  %2882 = vmatpush3.bf16.msra.mxu0 %v2993_v62 }
  0x4e   : > { %2883 = vmatprep.subr.bf16.mxu0 %v2996_v1 }
  0x51   : > { %2884 = vmatpush3.bf16.msra.mxu0 %v2996_v1 }
  0x52   : > { %2885 = vmatprep.subr.bf16.mxu0 %v2999_v4 }
  0x54   : > { %789 = vmatmul.mubr.bf16.gmra.mrb[12].mxu0 %v595_v60 }
  0x55   : > { %2889 = vmatprep.mubr.bf16.mxu0 %v3323_v13  ;;  %2886 = vmatpush3.bf16.msra.mxu0 %v2999_v4 }
  0x56   : > { %2887 = vmatprep.subr.bf16.mxu0 %v3002_v7 }
  0x59   : > { %2888 = vmatpush3.bf16.msra.mxu0 %v3002_v7 }
  0x5c   : > { %2890 = vmatmul.mubr.bf16.vlgmr.msra.gmra.mrb[16].mxu0 %v3378_v41 }
  0x5d   : > { %2893 = vmatprep.mubr.bf16.mxu0 %v594_v53  ;;  %v3009_v53 = vld [vmem:[%s3952_s7 + $0x58] sm:$0xff]  }
  0x64   : > { %2894 = vmatmul.mubr.bf16.gmra.mrb[20].mxu0 %v596_v57 }
 0x10f   : > { %v2625_v9 = vpop.f32.mrb[0].mxu0 }
 0x110   : > { %v2626_v10 = vpop.f32.mrb[1].mxu0 }
 0x111   : > { %v2627_v12 = vadd.f32 %v2626_v10, %v2625_v9  ;;  %v2628_v13 = vpop.f32.mrb[2].mxu0 }
 0x112   : > { %v2629_v14 = vpop.f32.mrb[3].mxu0 }
 0x113   : > { %v2630_v15 = vadd.f32 %v2629_v14, %v2628_v13  ;;  %v767_v16 = vadd.f32 %v2627_v12, %v3445_v11 }
 0x115   : > { %v770_v17 = vadd.f32 %v2630_v15, %v3445_v11  ;;  %v797_v18 = vmax.f32 %v767_v16, 0.0 }
 0x117   : > { %v2631_v19 = vpop.f32.mrb[4].mxu0  ;;  %v798_v20 = vmax.f32 %v770_v17, 0.0  ;;  %v813_v25 = vrot.slane %v797_v18, 7 }
 0x118   : > { %v2632_v21 = vpop.f32.mrb[5].mxu0 }
 0x119   : > { %v2633_v23 = vadd.f32 %v2632_v21, %v2631_v19  ;;  %v2634_v24 = vpop.f32.mrb[6].mxu0  ;;  %v814_v26 = vrot.slane %v798_v20, 7  ;;  %v838_v27 = vpack.c.bf16 %v798_v20, %v797_v18  ;;  %v3011_v18 = vld [vmem:[%s3952_s7 + $0x60] sm:$0xff]  }
 0x11a   : > { %v2635_v28 = vpop.f32.mrb[7].mxu0 }
 0x11b   : > { %v775_v29 = vadd.f32 %v2633_v23, %v3445_v11  ;;  %v2636_v30 = vadd.f32 %v2635_v28, %v2634_v24  ;;  %v815_v31 = vsel %vm564_vm0, %v813_v25, %v814_v26  ;;  %1012 = vmatprep.mubr.bf16.mxu1 %v838_v27  ;;  %v3013_v23 = vld [vmem:[%s3952_s7 + $0x68] sm:$0xff]   ;;  %v3017_v27 = vld [vmem:[%s3952_s7 + $0x78] sm:$0xff]  }
 0x11c   : > { %v2498_v33 = vpack.c.bf16 %v815_v31, %v813_v25  ;;  %v3014_v24 = vld [vmem:[%s3952_s7 + $0x28] sm:$0xff]   ;;  %v3015_v25 = vld [vmem:[%s3952_s7 + $0x70] sm:$0xff]   ;;  %v3018_v28 = vld [vmem:[%s3952_s7 + $0x38] sm:$0xff]  }
 0x11d   : > { %v799_v35 = vmax.f32 %v775_v29, 0.0  ;;  %v778_v36 = vadd.f32 %v2636_v30, %v3445_v11  ;;  %v3518_v30 = vld [vmem:[%s3956_s11] sm:$0xff]  }
 0x11e   : > { %2499 = vmatmul.mubr.msk.bf16.vlgmr.msra.gmra.mrb[0].mxu1 %vm3346_vm3, %v2498_v33 }
 0x11f   : > { %v816_v37 = vrot.slane %v799_v35, 7  ;;  %v800_v38 = vmax.f32 %v778_v36, 0.0  ;;  %v2637_v39 = vpop.f32.mrb[8].mxu0  ;;  %2702 = vmatpush3.bf16.msra.mxu1 %v3004_v32  ;;  %v3029_v36 = vld [vmem:[%s3954_s9 + $0x48] sm:$0xff]  }
 0x120   : > { %v2638_v41 = vpop.f32.mrb[9].mxu0  ;;  %2703 = vmatprep.subr.bf16.mxu1 %v3005_v34  ;;  %v3027_v34 = vld [vmem:[%s3954_s9 + $0x40] sm:$0xff]  }
 0x121   : > { %v818_v43 = vrot.slane %v800_v38, 7  ;;  %v2639_v44 = vadd.f32 %v2638_v41, %v2637_v39  ;;  %v2640_v45 = vpop.f32.mrb[10].mxu0  ;;  %v840_v46 = vpack.c.bf16 %v800_v38, %v799_v35  ;;  %v817_v22 = vsel %vm564_vm0, %v814_v26, %v816_v37  ;;  %v3016_v26 = vld [vmem:[%s3952_s7 + $0x30] sm:$0xff]   ;;  %v3028_v35 = vld [vmem:[%s3954_s9] sm:$0xff]   ;;  %2741 = vmatprep.subr.bf16.mxu0 %v3027_v34  ;;  %v3034_v41 = vld [vmem:[%s3954_s9 + $0x18] sm:$0xff]  }
 0x122   : > { %v2641_v47 = vpop.f32.mrb[11].mxu0  ;;  %2742 = vmatpush3.bf16.msra.mxu0 %v3028_v35  ;;  %v3031_v38 = vld [vmem:[%s3954_s9 + $0x50] sm:$0xff]  }
 0x123   : > { %v783_v48 = vadd.f32 %v2639_v44, %v3445_v11  ;;  %v2642_v49 = vadd.f32 %v2641_v47, %v2640_v45  ;;  %1020 = vmatprep.mubr.bf16.mxu1 %v840_v46  ;;  %v819_v50 = vsel %vm564_vm0, %v816_v37, %v818_v43  ;;  %2704 = vmatpush3.bf16.msra.mxu1 %v3006_v40  ;;  %v3030_v37 = vld [vmem:[%s3954_s9 + $0x8] sm:$0xff]   ;;  %v3032_v39 = vld [vmem:[%s3954_s9 + $0x10] sm:$0xff]   ;;  %v3033_v40 = vld [vmem:[%s3954_s9 + $0x58] sm:$0xff]  }
 0x124   : > { %v839_v52 = vpack.c.bf16 %v819_v50, %v817_v22  ;;  %2705 = vmatprep.subr.bf16.mxu1 %v3007_v42  ;;  %2743 = vmatprep.subr.bf16.mxu0 %v3029_v36  ;;  %v3035_v42 = vld [vmem:[%s3954_s9 + $0x60] sm:$0xff]   ;;  %v3021_v34 = vld [vmem:[%s3956_s11 + $0x10] sm:$0xff]  }
 0x125   : > { %v801_v54 = vmax.f32 %v783_v48, 0.0  ;;  %v786_v55 = vadd.f32 %v2642_v49, %v3445_v11  ;;  %v3557_v44 = vld [vmem:[%s3949_s4] ss:$0 sm:$0xff] }
 0x126   : > { %1021 = vmatmul.mubr.bf16.gmra.mrb[4].mxu1 %v839_v52  ;;  %2744 = vmatpush3.bf16.msra.mxu0 %v3030_v37  ;;  %v3562_v46 = vld [vmem:[%s3951_s6] ss:$0 sm:$0xff] }
 0x127   : > { %v820_v56 = vrot.slane %v801_v54, 7  ;;  %v802_v57 = vmax.f32 %v786_v55, 0.0  ;;  %v2643_v58 = vpop.f32.mrb[12].mxu0  ;;  %2706 = vmatpush3.bf16.msra.mxu1 %v3008_v51  ;;  %2745 = vmatprep.subr.bf16.mxu0 %v3031_v38 }
 0x128   : > { %v2644_v60 = vpop.f32.mrb[13].mxu0  ;;  %2707 = vmatprep.subr.bf16.mxu1 %v3009_v53 }
 0x129   : > { %v822_v61 = vrot.slane %v802_v57, 7  ;;  %v2645_v62 = vadd.f32 %v2644_v60, %v2643_v58  ;;  %v2646_v63 = vpop.f32.mrb[14].mxu0  ;;  %v842_v0 = vpack.c.bf16 %v802_v57, %v801_v54  ;;  %v821_v1 = vsel %vm564_vm0, %v818_v43, %v820_v56 }
 0x12a   : > { %v2647_v2 = vpop.f32.mrb[15].mxu0  ;;  %2746 = vmatpush3.bf16.msra.mxu0 %v3032_v39 }
 0x12b   : > { %v791_v3 = vadd.f32 %v2645_v62, %v3445_v11  ;;  %v2648_v4 = vadd.f32 %v2647_v2, %v2646_v63  ;;  %1028 = vmatprep.mubr.bf16.mxu1 %v842_v0  ;;  %v823_v5 = vsel %vm564_vm0, %v820_v56, %v822_v61  ;;  %2708 = vmatpush3.bf16.msra.mxu1 %v3010_v59 }
 0x12c   : > { %v841_v6 = vpack.c.bf16 %v823_v5, %v821_v1  ;;  %2709 = vmatprep.subr.bf16.mxu1 %v3011_v18  ;;  %2747 = vmatprep.subr.bf16.mxu0 %v3033_v40  ;;  %v3020_v18 = vld [vmem:[%s3956_s11 + $0x8] sm:$0xff]  }
 0x12d   : > { %v803_v7 = vmax.f32 %v791_v3, 0.0  ;;  %v794_v8 = vadd.f32 %v2648_v4, %v3445_v11  ;;  %v3012_v11 = vld [vmem:[%s3952_s7 + $0x20] sm:$0xff]  }
 0x12e   : > { %1029 = vmatmul.mubr.bf16.gmra.mrb[8].mxu1 %v841_v6  ;;  %2748 = vmatpush3.bf16.msra.mxu0 %v3034_v41 }
 0x12f   : > { %v824_v9 = vrot.slane %v803_v7, 7  ;;  %v804_v10 = vmax.f32 %v794_v8, 0.0  ;;  %v3485_v17 = vpop.f32.mrb[16].mxu0  ;;  %2710 = vmatpush3.bf16.msra.mxu1 %v3012_v11  ;;  %2749 = vmatprep.subr.bf16.mxu0 %v3035_v42 }
 0x130   : > { %v1158_v19 = vpop.f32.mrb[17].mxu0  ;;  %2711 = vmatprep.subr.bf16.mxu1 %v3013_v23  ;;  %v1167_v3 = vadd.f32 %v3485_v17, %v3562_v46 }
 0x131   : > { %v826_v12 = vrot.slane %v804_v10, 7  ;;  %v844_v13 = vpack.c.bf16 %v804_v10, %v803_v7  ;;  %v825_v14 = vsel %vm564_vm0, %v822_v61, %v824_v9  ;;  %v3493_v20 = vpop.f32.mrb[18].mxu0  ;;  %v1159_v50 = vadd.f32 %v3562_v46, %v1158_v19 }
 0x132   : > { %v1161_v21 = vpop.f32.mrb[19].mxu0  ;;  %v1170_v10 = vadd.f32 %v3493_v20, %v3562_v46 }
 0x133   : > { %1036 = vmatprep.mubr.bf16.mxu1 %v844_v13  ;;  %v827_v15 = vsel %vm564_vm0, %v824_v9, %v826_v12  ;;  %2712 = vmatpush3.bf16.msra.mxu1 %v3014_v24  ;;  %v1162_v56 = vadd.f32 %v3562_v46, %v1161_v21 }
 0x134   : > { %v843_v16 = vpack.c.bf16 %v827_v15, %v825_v14  ;;  %2713 = vmatprep.subr.bf16.mxu1 %v3015_v25 }
 0x136   : > { %1037 = vmatmul.mubr.bf16.gmra.mrb[12].mxu1 %v843_v16 }
 0x137   : > { %2714 = vmatpush3.bf16.msra.mxu1 %v3016_v26  ;;  %v3513_v29 = vpop.f32.mrb[20].mxu0 }
 0x138   : > { %2715 = vmatprep.subr.bf16.mxu1 %v3017_v27  ;;  %v3520_v31 = vpop.f32.mrb[21].mxu0 }
 0x139   : > { %v3522_v32 = vpop.f32.mrb[22].mxu0  ;;  %v1175_v20 = vadd.f32 %v3562_v46, %v3520_v31 }
 0x13a   : > { %v3525_v33 = vpop.f32.mrb[23].mxu0 }
 0x13b   : > { %2716 = vmatpush3.bf16.msra.mxu1 %v3018_v28  ;;  %v1178_v41 = vadd.f32 %v3562_v46, %v3525_v33 }
 0x13c   : > { %2897 = vmatprep.subr.bf16.mxu1 %v3518_v30 }
 0x1f1   : > { %v2665_v43 = vpop.f32.mrb[0].mxu1 }
 0x1f2   : > { %v2666_v45 = vpop.f32.mrb[1].mxu1 }
 0x1f3   : > { %v2667_v22 = vadd.f32 %v2666_v45, %v2665_v43  ;;  %v2668_v47 = vpop.f32.mrb[2].mxu1 }
 0x1f4   : > { %v2669_v48 = vpop.f32.mrb[3].mxu1 }
 0x1f5   : > { %v1015_v49 = vadd.f32 %v2667_v22, %v3557_v44  ;;  %v2670_v51 = vadd.f32 %v2669_v48, %v2668_v47  ;;  %v3022_v22 = vld [vmem:[%s3956_s11 + $0x18] sm:$0xff]  }
 0x1f7   : > { %v1045_v52 = vmax.f32 %v1015_v49, 0.0  ;;  %v1018_v53 = vadd.f32 %v2670_v51, %v3557_v44 }
 0x1f9   : > { %v1189_v54 = vadd.f32 %v1159_v50, %v1045_v52  ;;  %v1046_v55 = vmax.f32 %v1018_v53, 0.0  ;;  %v2671_v57 = vpop.f32.mrb[4].mxu1 }
 0x1fa   : > { %v2672_v58 = vpop.f32.mrb[5].mxu1 }
 0x1fb   : > { %v1197_v59 = vmax.f32 %v1189_v54, 0.0  ;;  %v1190_v60 = vadd.f32 %v1162_v56, %v1046_v55  ;;  %v2673_v61 = vadd.f32 %v2672_v58, %v2671_v57  ;;  %v2674_v62 = vpop.f32.mrb[6].mxu1  ;;  %v1183_v55 = vadd.f32 %v3513_v29, %v3562_v46  ;;  %v3023_v56 = vld [vmem:[%s3956_s11 + $0x20] sm:$0xff]  }
 0x1fc   : > { %v2675_v63 = vpop.f32.mrb[7].mxu1 }
 0x1fd   : > { %v1198_v0 = vmax.f32 %v1190_v60, 0.0  ;;  %v1023_v1 = vadd.f32 %v2673_v61, %v3557_v44  ;;  %v2676_v2 = vadd.f32 %v2675_v63, %v2674_v62  ;;  %v1214_v4 = vrot.slane %v1197_v59, 6 }
 0x1fe   : > { %v1186_v62 = vadd.f32 %v3522_v32, %v3562_v46  ;;  %v3025_v32 = vld [vmem:[%s3956_s11 + $0x30] sm:$0xff]  }
 0x1ff   : > { %v1215_v5 = vrot.slane %v1198_v0, 6  ;;  %v1047_v6 = vmax.f32 %v1023_v1, 0.0  ;;  %v1026_v7 = vadd.f32 %v2676_v2, %v3557_v44  ;;  %v3573_v8 = vpack.c.bf16 %v1198_v0, %v1197_v59  ;;  %v3024_v2 = vld [vmem:[%s3956_s11 + $0x28] sm:$0xff]  }
 0x201   : > { %v1216_v12 = vsel %vm1213_vm4, %v1214_v4, %v1215_v5  ;;  %v1191_v13 = vadd.f32 %v1167_v3, %v1047_v6  ;;  %v1048_v14 = vmax.f32 %v1026_v7, 0.0  ;;  %v2677_v15 = vpop.f32.mrb[8].mxu1  ;;  %1413 = vmatprep.mubr.bf16.mxu1 %v3573_v8 }
 0x202   : > { %v2528_v16 = vpack.c.bf16 %v1216_v12, %v1214_v4  ;;  %v2678_v17 = vpop.f32.mrb[9].mxu1 }
 0x203   : > { %v1199_v19 = vmax.f32 %v1191_v13, 0.0  ;;  %v1192_v11 = vadd.f32 %v1170_v10, %v1048_v14  ;;  %v2679_v21 = vadd.f32 %v2678_v17, %v2677_v15  ;;  %v2680_v23 = vpop.f32.mrb[10].mxu1  ;;  %v3026_v13 = vld [vmem:[%s3956_s11 + $0x38] sm:$0xff]   ;;  %v3036_v14 = vld [vmem:[%s3954_s9 + $0x20] sm:$0xff]   ;;  %v3037_v15 = vld [vmem:[%s3954_s9 + $0x68] sm:$0xff]  }
 0x204   : > { %v2681_v24 = vpop.f32.mrb[11].mxu1  ;;  %2529 = vmatmul.mubr.msk.bf16.vlgmr.msra.gmra.mrb[16].mxu1 %vm3576_vm6, %v2528_v16  ;;  %2750 = vmatpush3.bf16.msra.mxu0 %v3036_v14  ;;  %v3038_v16 = vld [vmem:[%s3954_s9 + $0x28] sm:$0xff]   ;;  %v3040_v17 = vld [vmem:[%s3954_s9 + $0x30] sm:$0xff]  }
 0x205   : > { %v1217_v25 = vrot.slane %v1199_v19, 6  ;;  %v1200_v26 = vmax.f32 %v1192_v11, 0.0  ;;  %v1031_v27 = vadd.f32 %v2679_v21, %v3557_v44  ;;  %v2682_v28 = vadd.f32 %v2681_v24, %v2680_v23  ;;  %2898 = vmatpush3.bf16.msra.mxu1 %v3518_v30  ;;  %2751 = vmatprep.subr.bf16.mxu0 %v3037_v15  ;;  %v3043_v11 = vld [vmem:[%s3958_s13 + $0x40] sm:$0xff]  }
 0x206   : > { %2899 = vmatprep.subr.bf16.mxu1 %v3020_v18  ;;  %v3654_v23 = vld [vmem:[%s3953_s8] ss:$0 sm:$0xff] }
 0x207   : > { %v1219_v35 = vrot.slane %v1200_v26, 6  ;;  %v1049_v36 = vmax.f32 %v1031_v27, 0.0  ;;  %v1034_v31 = vadd.f32 %v2682_v28, %v3557_v44  ;;  %v1241_v37 = vpack.c.bf16 %v1200_v26, %v1199_v19  ;;  %v3042_v19 = vld [vmem:[%s3954_s9 + $0x38] sm:$0xff]  }
 0x208   : > { %v1218_v38 = vsel %vm1213_vm4, %v1215_v5, %v1217_v25  ;;  %2752 = vmatpush3.bf16.msra.mxu0 %v3038_v16 }
 0x209   : > { %v1193_v39 = vadd.f32 %v1175_v20, %v1049_v36  ;;  %v1050_v40 = vmax.f32 %v1034_v31, 0.0  ;;  %v2683_v42 = vpop.f32.mrb[12].mxu1  ;;  %1421 = vmatprep.mubr.bf16.mxu1 %v1241_v37  ;;  %2900 = vmatpush3.bf16.msra.mxu1 %v3020_v18  ;;  %v1220_v30 = vsel %vm1213_vm4, %v1217_v25, %v1219_v35  ;;  %v3041_v18 = vld [vmem:[%s3954_s9 + $0x78] sm:$0xff]  }
 0x20a   : > { %v2684_v43 = vpop.f32.mrb[13].mxu1  ;;  %v1240_v45 = vpack.c.bf16 %v1220_v30, %v1218_v38  ;;  %2901 = vmatprep.subr.bf16.mxu1 %v3021_v34 }
 0x20b   : > { %v1201_v47 = vmax.f32 %v1193_v39, 0.0  ;;  %v1194_v48 = vadd.f32 %v1178_v41, %v1050_v40  ;;  %v2685_v49 = vadd.f32 %v2684_v43, %v2683_v42  ;;  %v2686_v50 = vpop.f32.mrb[14].mxu1 }
 0x20c   : > { %v2687_v51 = vpop.f32.mrb[15].mxu1  ;;  %1422 = vmatmul.mubr.bf16.gmra.mrb[20].mxu1 %v1240_v45 }
 0x20d   : > { %v1221_v52 = vrot.slane %v1201_v47, 6  ;;  %v1202_v33 = vmax.f32 %v1194_v48, 0.0  ;;  %v1039_v53 = vadd.f32 %v2685_v49, %v3557_v44  ;;  %v2688_v54 = vadd.f32 %v2687_v51, %v2686_v50  ;;  %2902 = vmatpush3.bf16.msra.mxu1 %v3021_v34  ;;  %v3045_v49 = vld [vmem:[%s3958_s13 + $0x48] sm:$0xff]  }
 0x20e   : > { %2903 = vmatprep.subr.bf16.mxu1 %v3022_v22 }
 0x20f   : > { %v1223_v57 = vrot.slane %v1202_v33, 6  ;;  %v1051_v58 = vmax.f32 %v1039_v53, 0.0  ;;  %v1042_v59 = vadd.f32 %v2688_v54, %v3557_v44  ;;  %v1243_v60 = vpack.c.bf16 %v1202_v33, %v1201_v47  ;;  %v3044_v47 = vld [vmem:[%s3958_s13] sm:$0xff]   ;;  %v3046_v54 = vld [vmem:[%s3958_s13 + $0x8] sm:$0xff]  }
 0x210   : > { %v1222_v61 = vsel %vm1213_vm4, %v1219_v35, %v1221_v52 }
 0x211   : > { %v1195_v63 = vadd.f32 %v1183_v55, %v1051_v58  ;;  %v1052_v0 = vmax.f32 %v1042_v59, 0.0  ;;  %1429 = vmatprep.mubr.bf16.mxu1 %v1243_v60  ;;  %2904 = vmatpush3.bf16.msra.mxu1 %v3022_v22  ;;  %v1224_v29 = vsel %vm1213_vm4, %v1221_v52, %v1223_v57 }
 0x212   : > { %v1242_v1 = vpack.c.bf16 %v1224_v29, %v1222_v61  ;;  %2905 = vmatprep.subr.bf16.mxu1 %v3023_v56  ;;  %v3048_v29 = vld [vmem:[%s3958_s13 + $0x10] sm:$0xff]  }
 0x213   : > { %v1203_v3 = vmax.f32 %v1195_v63, 0.0  ;;  %v1196_v44 = vadd.f32 %v1186_v62, %v1052_v0 }
 0x214   : > { %1430 = vmatmul.mubr.bf16.gmra.mrb[24].mxu1 %v1242_v1 }
 0x215   : > { %v1225_v4 = vrot.slane %v1203_v3, 6  ;;  %v1204_v5 = vmax.f32 %v1196_v44, 0.0  ;;  %2906 = vmatpush3.bf16.msra.mxu1 %v3023_v56  ;;  %v3047_v56 = vld [vmem:[%s3958_s13 + $0x50] sm:$0xff]  }
 0x216   : > { %2907 = vmatprep.subr.bf16.mxu1 %v3024_v2 }
 0x217   : > { %v1227_v46 = vrot.slane %v1204_v5, 6  ;;  %v1245_v6 = vpack.c.bf16 %v1204_v5, %v1203_v3  ;;  %v1226_v7 = vsel %vm1213_vm4, %v1223_v57, %v1225_v4 }
 0x219   : > { %1437 = vmatprep.mubr.bf16.mxu1 %v1245_v6  ;;  %2908 = vmatpush3.bf16.msra.mxu1 %v3024_v2  ;;  %v1228_v10 = vsel %vm1213_vm4, %v1225_v4, %v1227_v46  ;;  %v3049_v2 = vld [vmem:[%s3958_s13 + $0x58] sm:$0xff]  }
 0x21a   : > { %v1244_v12 = vpack.c.bf16 %v1228_v10, %v1226_v7  ;;  %2909 = vmatprep.subr.bf16.mxu1 %v3025_v32  ;;  %v3050_v46 = vld [vmem:[%s3958_s13 + $0x18] sm:$0xff]  }
 0x21c   : > { %1438 = vmatmul.mubr.bf16.gmra.mrb[28].mxu1 %v1244_v12 }
 0x21d   : > { %2910 = vmatpush3.bf16.msra.mxu1 %v3025_v32  ;;  %2913 = vmatprep.mubr.bf16.mxu1 %v3573_v8  ;;  %v3039_v8 = vld [vmem:[%s3954_s9 + $0x70] sm:$0xff]  }
 0x21e   : > { %2911 = vmatprep.subr.bf16.mxu1 %v3026_v13  ;;  %2753 = vmatprep.subr.bf16.mxu0 %v3039_v8 }
 0x21f   : > { %2754 = vmatpush3.bf16.msra.mxu0 %v3040_v17 }
 0x220   : > { %2755 = vmatprep.subr.bf16.mxu0 %v3041_v18 }
 0x221   : > { %2912 = vmatpush3.bf16.msra.mxu1 %v3026_v13 }
 0x223   : > { %2756 = vmatpush3.bf16.msra.mxu0 %v3042_v19 }
 0x224   : > { %2914 = vmatmul.mubr.bf16.vlgmr.msra.gmra.mrb[32].mxu1 %v1241_v37  ;;  %2793 = vmatprep.subr.bf16.mxu0 %v3043_v11 }
 0x225   : > { %2917 = vmatprep.mubr.bf16.mxu1 %v1243_v60 }
 0x22c   : > { %2918 = vmatmul.mubr.bf16.gmra.mrb[36].mxu1 %v1245_v6 }
 0x2d7   : > { %v2717_v21 = vpop.f32.mrb[16].mxu1 }
 0x2d8   : > { %v2718_v20 = vpop.f32.mrb[17].mxu1 }
 0x2d9   : > { %v2719_v24 = vadd.f32 %v2718_v20, %v2717_v21  ;;  %v2720_v25 = vpop.f32.mrb[18].mxu1 }
 0x2da   : > { %v2721_v26 = vpop.f32.mrb[19].mxu1 }
 0x2db   : > { %v1416_v27 = vadd.f32 %v2719_v24, %v3654_v23  ;;  %v2722_v28 = vadd.f32 %v2721_v26, %v2720_v25 }
 0x2dd   : > { %v1446_v34 = vmax.f32 %v1416_v27, 0.0  ;;  %v1419_v35 = vadd.f32 %v2722_v28, %v3654_v23 }
 0x2df   : > { %v1447_v36 = vmax.f32 %v1419_v35, 0.0  ;;  %v2723_v31 = vpop.f32.mrb[20].mxu1  ;;  %v1462_v38 = vrot.slane %v1446_v34, 6 }
 0x2e0   : > { %v2724_v37 = vpop.f32.mrb[21].mxu1 }
 0x2e1   : > { %v1463_v39 = vrot.slane %v1447_v36, 6  ;;  %v2725_v40 = vadd.f32 %v2724_v37, %v2723_v31  ;;  %v2726_v41 = vpop.f32.mrb[22].mxu1  ;;  %v1487_v42 = vpack.c.bf16 %v1447_v36, %v1446_v34 }
 0x2e2   : > { %v2727_v30 = vpop.f32.mrb[23].mxu1 }
 0x2e3   : > { %v1464_v43 = vsel %vm1213_vm4, %v1462_v38, %v1463_v39  ;;  %v1424_v45 = vadd.f32 %v2725_v40, %v3654_v23  ;;  %v2728_v22 = vadd.f32 %v2727_v30, %v2726_v41  ;;  %1661 = vmatprep.mubr.bf16.mxu0 %v1487_v42  ;;  %v3051_v40 = vld [vmem:[%s3958_s13 + $0x60] sm:$0xff]   ;;  %v3053_v42 = vld [vmem:[%s3958_s13 + $0x68] sm:$0xff]  }
 0x2e4   : > { %v2549_v48 = vpack.c.bf16 %v1464_v43, %v1462_v38  ;;  %v3052_v41 = vld [vmem:[%s3958_s13 + $0x20] sm:$0xff]   ;;  %v3054_v30 = vld [vmem:[%s3958_s13 + $0x28] sm:$0xff]   ;;  %v3055_v43 = vld [vmem:[%s3958_s13 + $0x70] sm:$0xff]  }
 0x2e5   : > { %v1448_v50 = vmax.f32 %v1424_v45, 0.0  ;;  %v1427_v51 = vadd.f32 %v2728_v22, %v3654_v23  ;;  %v3056_v45 = vld [vmem:[%s3958_s13 + $0x30] sm:$0xff]   ;;  %v3057_v22 = vld [vmem:[%s3958_s13 + $0x78] sm:$0xff]  }
 0x2e6   : > { %2550 = vmatmul.mubr.msk.bf16.vlgmr.msra.gmra.mrb[24].mxu0 %vm3576_vm6, %v2549_v48  ;;  %v3059_v48 = vld [vmem:[%s3960_s15 + $0x40] sm:$0xff]  }
 0x2e7   : > { %v1465_v52 = vrot.slane %v1448_v50, 6  ;;  %v1449_v33 = vmax.f32 %v1427_v51, 0.0  ;;  %v2729_v53 = vpop.f32.mrb[24].mxu1  ;;  %2794 = vmatpush3.bf16.msra.mxu0 %v3044_v47  ;;  %v3058_v47 = vld [vmem:[%s3958_s13 + $0x38] sm:$0xff]   ;;  %2833 = vmatprep.subr.bf16.mxu1 %v3059_v48  ;;  %v3062_v51 = vld [vmem:[%s3960_s15 + $0x8] sm:$0xff]  }
 0x2e8   : > { %v2730_v55 = vpop.f32.mrb[25].mxu1  ;;  %2795 = vmatprep.subr.bf16.mxu0 %v3045_v49  ;;  %v3060_v49 = vld [vmem:[%s3960_s15] sm:$0xff]  }
 0x2e9   : > { %v1467_v57 = vrot.slane %v1449_v33, 6  ;;  %v2731_v58 = vadd.f32 %v2730_v55, %v2729_v53  ;;  %v2732_v59 = vpop.f32.mrb[26].mxu1  ;;  %v1489_v60 = vpack.c.bf16 %v1449_v33, %v1448_v50  ;;  %v1466_v9 = vsel %vm1213_vm4, %v1463_v39, %v1465_v52  ;;  %v3061_v50 = vld [vmem:[%s3960_s15 + $0x48] sm:$0xff]   ;;  %2834 = vmatpush3.bf16.msra.mxu1 %v3060_v49  ;;  %v3064_v33 = vld [vmem:[%s3960_s15 + $0x10] sm:$0xff]   ;;  %v3065_v53 = vld [vmem:[%s3960_s15 + $0x58] sm:$0xff]  }
 0x2ea   : > { %v2733_v61 = vpop.f32.mrb[27].mxu1  ;;  %2835 = vmatprep.subr.bf16.mxu1 %v3061_v50  ;;  %v3067_v55 = vld [vmem:[%s3960_s15 + $0x60] sm:$0xff]  }
 0x2eb   : > { %v1432_v62 = vadd.f32 %v2731_v58, %v3654_v23  ;;  %v2734_v63 = vadd.f32 %v2733_v61, %v2732_v59  ;;  %1669 = vmatprep.mubr.bf16.mxu0 %v1489_v60  ;;  %v1468_v0 = vsel %vm1213_vm4, %v1465_v52, %v1467_v57  ;;  %2796 = vmatpush3.bf16.msra.mxu0 %v3046_v54  ;;  %v3063_v52 = vld [vmem:[%s3960_s15 + $0x50] sm:$0xff]   ;;  %v3066_v54 = vld [vmem:[%s3960_s15 + $0x18] sm:$0xff]  }
 0x2ec   : > { %v1488_v1 = vpack.c.bf16 %v1468_v0, %v1466_v9  ;;  %2797 = vmatprep.subr.bf16.mxu0 %v3047_v56  ;;  %v3765_v9 = vld [vmem:[%s3957_s12] ss:$0 sm:$0xff] }
 0x2ed   : > { %v1450_v3 = vmax.f32 %v1432_v62, 0.0  ;;  %v1435_v44 = vadd.f32 %v2734_v63, %v3654_v23  ;;  %2836 = vmatpush3.bf16.msra.mxu1 %v3062_v51 }
 0x2ee   : > { %1670 = vmatmul.mubr.bf16.gmra.mrb[28].mxu0 %v1488_v1  ;;  %2837 = vmatprep.subr.bf16.mxu1 %v3063_v52 }
 0x2ef   : > { %v1469_v4 = vrot.slane %v1450_v3, 6  ;;  %v1451_v5 = vmax.f32 %v1435_v44, 0.0  ;;  %v2735_v32 = vpop.f32.mrb[28].mxu1  ;;  %2798 = vmatpush3.bf16.msra.mxu0 %v3048_v29 }
 0x2f0   : > { %v2736_v6 = vpop.f32.mrb[29].mxu1  ;;  %2799 = vmatprep.subr.bf16.mxu0 %v3049_v2 }
 0x2f1   : > { %v1471_v7 = vrot.slane %v1451_v5, 6  ;;  %v2737_v10 = vadd.f32 %v2736_v6, %v2735_v32  ;;  %v2738_v12 = vpop.f32.mrb[30].mxu1  ;;  %v1491_v13 = vpack.c.bf16 %v1451_v5, %v1450_v3  ;;  %v1470_v14 = vsel %vm1213_vm4, %v1467_v57, %v1469_v4  ;;  %2838 = vmatpush3.bf16.msra.mxu1 %v3064_v33  ;;  %v3760_v57 = vld [vmem:[%s3955_s10] ss:$0 sm:$0xff] }
 0x2f2   : > { %v2739_v15 = vpop.f32.mrb[31].mxu1  ;;  %2839 = vmatprep.subr.bf16.mxu1 %v3065_v53 }
 0x2f3   : > { %v1440_v16 = vadd.f32 %v2737_v10, %v3654_v23  ;;  %v2740_v8 = vadd.f32 %v2739_v15, %v2738_v12  ;;  %1677 = vmatprep.mubr.bf16.mxu0 %v1491_v13  ;;  %v1472_v17 = vsel %vm1213_vm4, %v1469_v4, %v1471_v7  ;;  %2800 = vmatpush3.bf16.msra.mxu0 %v3050_v46 }
 0x2f4   : > { %v1490_v18 = vpack.c.bf16 %v1472_v17, %v1470_v14  ;;  %2801 = vmatprep.subr.bf16.mxu0 %v3051_v40 }
 0x2f5   : > { %v1452_v19 = vmax.f32 %v1440_v16, 0.0  ;;  %v1443_v11 = vadd.f32 %v2740_v8, %v3654_v23  ;;  %2840 = vmatpush3.bf16.msra.mxu1 %v3066_v54 }
 0x2f6   : > { %1678 = vmatmul.mubr.bf16.gmra.mrb[32].mxu0 %v1490_v18  ;;  %2841 = vmatprep.subr.bf16.mxu1 %v3067_v55 }
 0x2f7   : > { %v1473_v21 = vrot.slane %v1452_v19, 6  ;;  %v1453_v20 = vmax.f32 %v1443_v11, 0.0  ;;  %v3692_v24 = vpop.f32.mrb[32].mxu1  ;;  %2802 = vmatpush3.bf16.msra.mxu0 %v3052_v41 }
 0x2f8   : > { %v1807_v25 = vpop.f32.mrb[33].mxu1  ;;  %2803 = vmatprep.subr.bf16.mxu0 %v3053_v42  ;;  %v1816_v15 = vadd.f32 %v3692_v24, %v3765_v9 }
 0x2f9   : > { %v1475_v26 = vrot.slane %v1453_v20, 6  ;;  %v3694_v27 = vpop.f32.mrb[34].mxu1  ;;  %v1493_v28 = vpack.c.bf16 %v1453_v20, %v1452_v19  ;;  %v1474_v34 = vsel %vm1213_vm4, %v1471_v7, %v1473_v21  ;;  %v1808_v0 = vadd.f32 %v3765_v9, %v1807_v25 }
 0x2fa   : > { %v1810_v35 = vpop.f32.mrb[35].mxu1 }
 0x2fb   : > { %1685 = vmatprep.mubr.bf16.mxu0 %v1493_v28  ;;  %v1476_v36 = vsel %vm1213_vm4, %v1473_v21, %v1475_v26  ;;  %2804 = vmatpush3.bf16.msra.mxu0 %v3054_v30  ;;  %v1811_v2 = vadd.f32 %v3765_v9, %v1810_v35  ;;  %v1819_v21 = vadd.f32 %v3694_v27, %v3765_v9 }
 0x2fc   : > { %v1492_v31 = vpack.c.bf16 %v1476_v36, %v1474_v34  ;;  %2805 = vmatprep.subr.bf16.mxu0 %v3055_v43 }
 0x2fe   : > { %1686 = vmatmul.mubr.bf16.gmra.mrb[36].mxu0 %v1492_v31 }
 0x2ff   : > { %v3698_v37 = vpop.f32.mrb[36].mxu1  ;;  %2806 = vmatpush3.bf16.msra.mxu0 %v3056_v45 }
 0x300   : > { %v3700_v23 = vpop.f32.mrb[37].mxu1  ;;  %2807 = vmatprep.subr.bf16.mxu0 %v3057_v22 }
 0x301   : > { %v3702_v38 = vpop.f32.mrb[38].mxu1  ;;  %v1824_v45 = vadd.f32 %v3765_v9, %v3700_v23 }
 0x302   : > { %v3704_v39 = vpop.f32.mrb[39].mxu1 }
 0x303   : > { %2808 = vmatpush3.bf16.msra.mxu0 %v3058_v47  ;;  %v1827_v50 = vadd.f32 %v3765_v9, %v3704_v39 }
 0x3b9   : > { %v2757_v56 = vpop.f32.mrb[24].mxu0 }
 0x3ba   : > { %v2758_v58 = vpop.f32.mrb[25].mxu0 }
 0x3bb   : > { %v2759_v59 = vadd.f32 %v2758_v58, %v2757_v56  ;;  %v2760_v60 = vpop.f32.mrb[26].mxu0 }
 0x3bc   : > { %v2761_v61 = vpop.f32.mrb[27].mxu0 }
 0x3bd   : > { %v1664_v62 = vadd.f32 %v2759_v59, %v3760_v57  ;;  %v2762_v63 = vadd.f32 %v2761_v61, %v2760_v60 }
 0x3bf   : > { %v1694_v29 = vmax.f32 %v1664_v62, 0.0  ;;  %v1667_v1 = vadd.f32 %v2762_v63, %v3760_v57 }
 0x3c1   : > { %v1838_v3 = vadd.f32 %v1808_v0, %v1694_v29  ;;  %v1695_v44 = vmax.f32 %v1667_v1, 0.0  ;;  %v2763_v4 = vpop.f32.mrb[28].mxu0  ;;  %v1832_v29 = vadd.f32 %v3698_v37, %v3765_v9 }
 0x3c2   : > { %v2764_v5 = vpop.f32.mrb[29].mxu0 }
 0x3c3   : > { %v3771_v32 = vmax.f32 %v1838_v3, 0.0  ;;  %v1839_v46 = vadd.f32 %v1811_v2, %v1695_v44  ;;  %v2765_v6 = vadd.f32 %v2764_v5, %v2763_v4  ;;  %v2766_v7 = vpop.f32.mrb[30].mxu0  ;;  %v1835_v4 = vadd.f32 %v3702_v38, %v3765_v9 }
 0x3c4   : > { %v2767_v10 = vpop.f32.mrb[31].mxu0 }
 0x3c5   : > { %v3773_v12 = vmax.f32 %v1839_v46, 0.0  ;;  %v1672_v13 = vadd.f32 %v2765_v6, %v3760_v57  ;;  %v2768_v14 = vadd.f32 %v2767_v10, %v2766_v7  ;;  %v1863_v16 = vrot.slane %v3771_v32, 4 }
 0x3c7   : > { %v1864_v8 = vrot.slane %v3773_v12, 4  ;;  %v1696_v17 = vmax.f32 %v1672_v13, 0.0  ;;  %v1675_v18 = vadd.f32 %v2768_v14, %v3760_v57  ;;  %v1888_v19 = vpack.c.bf16 %v3773_v12, %v3771_v32 }
 0x3c9   : > { %v1865_v20 = vsel %vm1862_vm7, %v1863_v16, %v1864_v8  ;;  %v1840_v24 = vadd.f32 %v1816_v15, %v1696_v17  ;;  %v1697_v25 = vmax.f32 %v1675_v18, 0.0  ;;  %v2769_v26 = vpop.f32.mrb[32].mxu0  ;;  %2062 = vmatprep.mubr.bf16.mxu0 %v1888_v19  ;;  %v3068_v17 = vld [vmem:[%s3960_s15 + $0x20] sm:$0xff]   ;;  %v3069_v18 = vld [vmem:[%s3960_s15 + $0x68] sm:$0xff]  }
 0x3ca   : > { %v2579_v28 = vpack.c.bf16 %v1865_v20, %v1863_v16  ;;  %v2770_v34 = vpop.f32.mrb[33].mxu0  ;;  %2842 = vmatpush3.bf16.msra.mxu1 %v3068_v17  ;;  %v3070_v19 = vld [vmem:[%s3960_s15 + $0x28] sm:$0xff]   ;;  %v3072_v20 = vld [vmem:[%s3960_s15 + $0x30] sm:$0xff]  }
 0x3cb   : > { %v3792_v35 = vmax.f32 %v1840_v24, 0.0  ;;  %v1841_v36 = vadd.f32 %v1819_v21, %v1697_v25  ;;  %v2771_v31 = vadd.f32 %v2770_v34, %v2769_v26  ;;  %v2772_v40 = vpop.f32.mrb[34].mxu0  ;;  %2843 = vmatprep.subr.bf16.mxu1 %v3069_v18  ;;  %v3071_v21 = vld [vmem:[%s3960_s15 + $0x70] sm:$0xff]   ;;  %v3073_v24 = vld [vmem:[%s3960_s15 + $0x78] sm:$0xff]  }
 0x3cc   : > { %v2773_v41 = vpop.f32.mrb[35].mxu0  ;;  %2580 = vmatmul.mubr.msk.bf16.vlgmr.msra.gmra.mrb[40].mxu0 %vm3785_vm9, %v2579_v28  ;;  %v3074_v25 = vld [vmem:[%s3960_s15 + $0x38] sm:$0xff]   ;;  %v2560_v28 = vld [vmem:[%s3959_s14] ss:$0 sm:$0xff] }
 0x3cd   : > { %v3796_v42 = vmax.f32 %v1841_v36, 0.0  ;;  %v1680_v27 = vadd.f32 %v2771_v31, %v3760_v57  ;;  %v2774_v30 = vadd.f32 %v2773_v41, %v2772_v40  ;;  %v1866_v43 = vrot.slane %v3792_v35, 4 }
 0x3ce   : > { %2844 = vmatpush3.bf16.msra.mxu1 %v3070_v19 }
 0x3cf   : > { %v1698_v22 = vmax.f32 %v1680_v27, 0.0  ;;  %v1683_v47 = vadd.f32 %v2774_v30, %v3760_v57  ;;  %v1890_v48 = vpack.c.bf16 %v3796_v42, %v3792_v35  ;;  %v1868_v49 = vrot.slane %v3796_v42, 4  ;;  %2845 = vmatprep.subr.bf16.mxu1 %v3071_v21 }
 0x3d0   : > { %v1867_v54 = vsel %vm1862_vm7, %v1864_v8, %v1866_v43 }
 0x3d1   : > { %v1842_v51 = vadd.f32 %v1824_v45, %v1698_v22  ;;  %v1699_v52 = vmax.f32 %v1683_v47, 0.0  ;;  %v2775_v33 = vpop.f32.mrb[36].mxu0  ;;  %2070 = vmatprep.mubr.bf16.mxu0 %v1890_v48  ;;  %v1869_v23 = vsel %vm1862_vm7, %v1866_v43, %v1868_v49 }
 0x3d2   : > { %v2776_v53 = vpop.f32.mrb[37].mxu0  ;;  %v1889_v60 = vpack.c.bf16 %v1869_v23, %v1867_v54  ;;  %2846 = vmatpush3.bf16.msra.mxu1 %v3072_v20 }
 0x3d3   : > { %v3810_v55 = vmax.f32 %v1842_v51, 0.0  ;;  %v1843_v56 = vadd.f32 %v1827_v50, %v1699_v52  ;;  %v2777_v58 = vadd.f32 %v2776_v53, %v2775_v33  ;;  %v2778_v59 = vpop.f32.mrb[38].mxu0  ;;  %2847 = vmatprep.subr.bf16.mxu1 %v3073_v24 }
 0x3d4   : > { %v2779_v61 = vpop.f32.mrb[39].mxu0  ;;  %2071 = vmatmul.mubr.bf16.gmra.mrb[44].mxu0 %v1889_v60 }
 0x3d5   : > { %v3812_v62 = vmax.f32 %v1843_v56, 0.0  ;;  %v1688_v39 = vadd.f32 %v2777_v58, %v3760_v57  ;;  %v2780_v63 = vadd.f32 %v2779_v61, %v2778_v59  ;;  %v1870_v0 = vrot.slane %v3810_v55, 4 }
 0x3d6   : > { %2848 = vmatpush3.bf16.msra.mxu1 %v3074_v25 }
 0x3d7   : > { %v1700_v1 = vmax.f32 %v1688_v39, 0.0  ;;  %v1691_v2 = vadd.f32 %v2780_v63, %v3760_v57  ;;  %v1892_v3 = vpack.c.bf16 %v3812_v62, %v3810_v55  ;;  %v1872_v44 = vrot.slane %v3812_v62, 4 }
 0x3d8   : > { %v1871_v6 = vsel %vm1862_vm7, %v1868_v49, %v1870_v0 }
 0x3d9   : > { %v1844_v5 = vadd.f32 %v1832_v29, %v1700_v1  ;;  %v1701_v46 = vmax.f32 %v1691_v2, 0.0  ;;  %2078 = vmatprep.mubr.bf16.mxu0 %v1892_v3  ;;  %v1873_v7 = vsel %vm1862_vm7, %v1870_v0, %v1872_v44 }
 0x3da   : > { %v1891_v13 = vpack.c.bf16 %v1873_v7, %v1871_v6 }
 0x3db   : > { %v3826_v10 = vmax.f32 %v1844_v5, 0.0  ;;  %v1845_v37 = vadd.f32 %v1835_v4, %v1701_v46 }
 0x3dc   : > { %2079 = vmatmul.mubr.bf16.gmra.mrb[48].mxu0 %v1891_v13 }
 0x3dd   : > { %v3828_v57 = vmax.f32 %v1845_v37, 0.0  ;;  %v1874_v14 = vrot.slane %v3826_v10, 4 }
 0x3df   : > { %v1894_v15 = vpack.c.bf16 %v3828_v57, %v3826_v10  ;;  %v1876_v38 = vrot.slane %v3828_v57, 4  ;;  %v1875_v9 = vsel %vm1862_vm7, %v1872_v44, %v1874_v14 }
 0x3e1   : > { %2086 = vmatprep.mubr.bf16.mxu0 %v1894_v15  ;;  %v1877_v16 = vsel %vm1862_vm7, %v1874_v14, %v1876_v38 }
 0x3e2   : > { %v1893_v8 = vpack.c.bf16 %v1877_v16, %v1875_v9 }
 0x3e4   : > { %2087 = vmatmul.mubr.bf16.gmra.mrb[52].mxu0 %v1893_v8 }
 0x49f   : > { %v2809_v26 = vpop.f32.mrb[40].mxu0 }
 0x4a0   : > { %v2810_v34 = vpop.f32.mrb[41].mxu0 }
 0x4a1   : > { %v2811_v36 = vadd.f32 %v2810_v34, %v2809_v26  ;;  %v2812_v31 = vpop.f32.mrb[42].mxu0 }
 0x4a2   : > { %v2813_v40 = vpop.f32.mrb[43].mxu0 }
 0x4a3   : > { %v2065_v41 = vadd.f32 %v2811_v36, %v2560_v28  ;;  %v2814_v27 = vadd.f32 %v2813_v40, %v2812_v31 }
 0x4a5   : > { %v2095_v30 = vmax.f32 %v2065_v41, 0.0  ;;  %v2068_v43 = vadd.f32 %v2814_v27, %v2560_v28 }
 0x4a7   : > { %v2096_v45 = vmax.f32 %v2068_v43, 0.0  ;;  %v2815_v22 = vpop.f32.mrb[44].mxu0  ;;  %v2111_v47 = vrot.slane %v2095_v30, 4 }
 0x4a8   : > { %v2816_v49 = vpop.f32.mrb[45].mxu0 }
 0x4a9   : > { %v2112_v48 = vrot.slane %v2096_v45, 4  ;;  %v2136_v50 = vpack.c.bf16 %v2096_v45, %v2095_v30  ;;  %v2817_v51 = vadd.f32 %v2816_v49, %v2815_v22  ;;  %v2818_v52 = vpop.f32.mrb[46].mxu0  ;;  %v2581_v45 = vld [vmem:[%s3961_s16] ss:$0 sm:$0xff] }
 0x4aa   : > { %v2819_v53 = vpop.f32.mrb[47].mxu0 }
 0x4ab   : > { %v2113_v33 = vsel %vm1862_vm7, %v2111_v47, %v2112_v48  ;;  %2310 = vmatprep.mubr.bf16.mxu1 %v2136_v50  ;;  %v2073_v23 = vadd.f32 %v2817_v51, %v2560_v28  ;;  %v2820_v56 = vadd.f32 %v2819_v53, %v2818_v52 }
 0x4ac   : > { %v2600_v54 = vpack.c.bf16 %v2113_v33, %v2111_v47 }
 0x4ad   : > { %v2097_v58 = vmax.f32 %v2073_v23, 0.0  ;;  %v2076_v59 = vadd.f32 %v2820_v56, %v2560_v28 }
 0x4ae   : > { %2601 = vmatmul.mubr.msk.bf16.vlgmr.msra.gmra.mrb[40].mxu1 %vm3785_vm9, %v2600_v54 }
 0x4af   : > { %v2114_v60 = vrot.slane %v2097_v58, 4  ;;  %v2098_v61 = vmax.f32 %v2076_v59, 0.0  ;;  %v2821_v39 = vpop.f32.mrb[48].mxu0 }
 0x4b0   : > { %v2822_v63 = vpop.f32.mrb[49].mxu0 }
 0x4b1   : > { %v2116_v0 = vrot.slane %v2098_v61, 4  ;;  %v2823_v29 = vadd.f32 %v2822_v63, %v2821_v39  ;;  %v2824_v1 = vpop.f32.mrb[50].mxu0  ;;  %v2138_v2 = vpack.c.bf16 %v2098_v61, %v2097_v58  ;;  %v2115_v3 = vsel %vm1862_vm7, %v2112_v48, %v2114_v60 }
 0x4b2   : > { %v2825_v44 = vpop.f32.mrb[51].mxu0 }
 0x4b3   : > { %v2081_v4 = vadd.f32 %v2823_v29, %v2560_v28  ;;  %v2826_v5 = vadd.f32 %v2825_v44, %v2824_v1  ;;  %2318 = vmatprep.mubr.bf16.mxu1 %v2138_v2  ;;  %v2117_v46 = vsel %vm1862_vm7, %v2114_v60, %v2116_v0 }
 0x4b4   : > { %v2137_v6 = vpack.c.bf16 %v2117_v46, %v2115_v3 }
 0x4b5   : > { %v2099_v7 = vmax.f32 %v2081_v4, 0.0  ;;  %v2084_v11 = vadd.f32 %v2826_v5, %v2560_v28 }
 0x4b6   : > { %2319 = vmatmul.mubr.bf16.gmra.mrb[44].mxu1 %v2137_v6 }
 0x4b7   : > { %v2118_v37 = vrot.slane %v2099_v7, 4  ;;  %v2100_v13 = vmax.f32 %v2084_v11, 0.0  ;;  %v2827_v14 = vpop.f32.mrb[52].mxu0 }
 0x4b8   : > { %v2828_v15 = vpop.f32.mrb[53].mxu0 }
 0x4b9   : > { %v2120_v38 = vrot.slane %v2100_v13, 4  ;;  %v2829_v9 = vadd.f32 %v2828_v15, %v2827_v14  ;;  %v2830_v16 = vpop.f32.mrb[54].mxu0  ;;  %v2140_v8 = vpack.c.bf16 %v2100_v13, %v2099_v7  ;;  %v2119_v17 = vsel %vm1862_vm7, %v2116_v0, %v2118_v37 }
 0x4ba   : > { %v2831_v18 = vpop.f32.mrb[55].mxu0 }
 0x4bb   : > { %v2089_v19 = vadd.f32 %v2829_v9, %v2560_v28  ;;  %v2832_v21 = vadd.f32 %v2831_v18, %v2830_v16  ;;  %2326 = vmatprep.mubr.bf16.mxu1 %v2140_v8  ;;  %v2121_v20 = vsel %vm1862_vm7, %v2118_v37, %v2120_v38 }
 0x4bc   : > { %v2139_v24 = vpack.c.bf16 %v2121_v20, %v2119_v17 }
 0x4bd   : > { %v2101_v25 = vmax.f32 %v2089_v19, 0.0  ;;  %v2092_v26 = vadd.f32 %v2832_v21, %v2560_v28 }
 0x4be   : > { %2327 = vmatmul.mubr.bf16.gmra.mrb[48].mxu1 %v2139_v24 }
 0x4bf   : > { %v2122_v34 = vrot.slane %v2101_v25, 4  ;;  %v2102_v36 = vmax.f32 %v2092_v26, 0.0 }
 0x4c1   : > { %v2124_v31 = vrot.slane %v2102_v36, 4  ;;  %v2142_v40 = vpack.c.bf16 %v2102_v36, %v2101_v25  ;;  %v2123_v41 = vsel %vm1862_vm7, %v2120_v38, %v2122_v34 }
 0x4c3   : > { %2334 = vmatprep.mubr.bf16.mxu1 %v2142_v40  ;;  %v2125_v27 = vsel %vm1862_vm7, %v2122_v34, %v2124_v31 }
 0x4c4   : > { %v2141_v30 = vpack.c.bf16 %v2125_v27, %v2123_v41 }
 0x4c6   : > { %2335 = vmatmul.mubr.bf16.gmra.mrb[52].mxu1 %v2141_v30 }
 0x581   : > { %v2849_v43 = vpop.f32.mrb[40].mxu1 }
 0x582   : > { %v2850_v28 = vpop.f32.mrb[41].mxu1 }
 0x583   : > { %v2851_v22 = vadd.f32 %v2850_v28, %v2849_v43  ;;  %v2852_v47 = vpop.f32.mrb[42].mxu1 }
 0x584   : > { %v2853_v48 = vpop.f32.mrb[43].mxu1 }
 0x585   : > { %v2313_v49 = vadd.f32 %v2851_v22, %v2581_v45  ;;  %v2854_v50 = vadd.f32 %v2853_v48, %v2852_v47 }
 0x587   : > { %v2343_v51 = vmax.f32 %v2313_v49, 0.0  ;;  %v2316_v52 = vadd.f32 %v2854_v50, %v2581_v45 }
 0x589   : > { %v2351_v33 = vadd.f32 %v2343_v51, %v3771_v32  ;;  %v2344_v53 = vmax.f32 %v2316_v52, 0.0  ;;  %v2855_v54 = vpop.f32.mrb[44].mxu1 }
 0x58a   : > { %v2856_v58 = vpop.f32.mrb[45].mxu1 }
 0x58b   : > { %v2359_v23 = vmax.f32 %v2351_v33, 0.0  ;;  %v2352_v56 = vadd.f32 %v2344_v53, %v3773_v12  ;;  %v2857_v59 = vadd.f32 %v2856_v58, %v2855_v54  ;;  %v2858_v60 = vpop.f32.mrb[46].mxu1 }
 0x58c   : > { %v2859_v39 = vpop.f32.mrb[47].mxu1 }
 0x58d   : > { %2367 = vst [vmem:[%s3877_s29] sm:$0xff] %v2359_v23  ;;  %v2360_v61 = vmax.f32 %v2352_v56, 0.0  ;;  %v2321_v63 = vadd.f32 %v2857_v59, %v2581_v45  ;;  %v2860_v0 = vadd.f32 %v2859_v39, %v2858_v60 }
 0x58f   : > { %2368 = vst [vmem:[%s3877_s29 + $0x8] sm:$0xff] %v2360_v61  ;;  %v2345_v32 = vmax.f32 %v2321_v63, 0.0  ;;  %v2324_v29 = vadd.f32 %v2860_v0, %v2581_v45 }
 0x591   : > { %v2353_v1 = vadd.f32 %v2345_v32, %v3792_v35  ;;  %v2346_v12 = vmax.f32 %v2324_v29, 0.0  ;;  %v2861_v2 = vpop.f32.mrb[48].mxu1 }
 0x592   : > { %v2862_v3 = vpop.f32.mrb[49].mxu1 }
 0x593   : > { %v2361_v44 = vmax.f32 %v2353_v1, 0.0  ;;  %v2354_v4 = vadd.f32 %v2346_v12, %v3796_v42  ;;  %v2863_v5 = vadd.f32 %v2862_v3, %v2861_v2  ;;  %v2864_v46 = vpop.f32.mrb[50].mxu1 }
 0x594   : > { %v2865_v6 = vpop.f32.mrb[51].mxu1 }
 0x595   : > { %2369 = vst [vmem:[%s3877_s29 + $0x10] sm:$0xff] %v2361_v44  ;;  %v2362_v7 = vmax.f32 %v2354_v4, 0.0  ;;  %v2329_v11 = vadd.f32 %v2863_v5, %v2581_v45  ;;  %v2866_v37 = vadd.f32 %v2865_v6, %v2864_v46 }
 0x597   : > { %2370 = vst [vmem:[%s3877_s29 + $0x18] sm:$0xff] %v2362_v7  ;;  %v2347_v13 = vmax.f32 %v2329_v11, 0.0  ;;  %v2332_v14 = vadd.f32 %v2866_v37, %v2581_v45 }
 0x599   : > { %v2355_v35 = vadd.f32 %v2347_v13, %v3810_v55  ;;  %v2348_v15 = vmax.f32 %v2332_v14, 0.0  ;;  %v2867_v38 = vpop.f32.mrb[52].mxu1 }
 0x59a   : > { %v2868_v9 = vpop.f32.mrb[53].mxu1 }
 0x59b   : > { %v2363_v42 = vmax.f32 %v2355_v35, 0.0  ;;  %v2356_v16 = vadd.f32 %v2348_v15, %v3812_v62  ;;  %v2869_v8 = vadd.f32 %v2868_v9, %v2867_v38  ;;  %v2870_v17 = vpop.f32.mrb[54].mxu1 }
 0x59c   : > { %v2871_v18 = vpop.f32.mrb[55].mxu1 }
 0x59d   : > { %2371 = vst [vmem:[%s3877_s29 + $0x20] sm:$0xff] %v2363_v42  ;;  %v2364_v19 = vmax.f32 %v2356_v16, 0.0  ;;  %v2337_v21 = vadd.f32 %v2869_v8, %v2581_v45  ;;  %v2872_v20 = vadd.f32 %v2871_v18, %v2870_v17 }
 0x59f   : > { %2372 = vst [vmem:[%s3877_s29 + $0x28] sm:$0xff] %v2364_v19  ;;  %v2349_v55 = vmax.f32 %v2337_v21, 0.0  ;;  %v2340_v24 = vadd.f32 %v2872_v20, %v2581_v45 }
 0x5a1   : > { %v2357_v25 = vadd.f32 %v2349_v55, %v3826_v10  ;;  %v2350_v26 = vmax.f32 %v2340_v24, 0.0 }
 0x5a3   : > { %v2365_v62 = vmax.f32 %v2357_v25, 0.0  ;;  %v2358_v34 = vadd.f32 %v2350_v26, %v3828_v57 }
 0x5a5   : > { %2373 = vst [vmem:[%s3877_s29 + $0x30] sm:$0xff] %v2365_v62  ;;  %v2366_v36 = vmax.f32 %v2358_v34, 0.0 }
 0x5a7   : > { %2374 = vst [vmem:[%s3877_s29 + $0x38] sm:$0xff] %v2366_v36 }
 0x5a8   : > { %3088 = shalt.err (!%p3085_p3)
}
 0x5a9   : > { %s3089_s21 = scalar_lea.hbm %s3896_s24, 1024  ;;  %s3093_s18 = scalar_lea.hbm %s3991_s17, 2048 }
 0x5aa   : > { %p3090_p4 = scmp.ne.s32.totalorder %s3896_s24, %s3089_s21  ;;  %p3094_p9 = scmp.lt.u32.totalorder %s3896_s24, %s3991_s17 }
 0x5ab   : > { %p3095_p10 = scmp.lt.u32.totalorder %s3093_s18, %s3089_s21  ;;  %p3097_p12 = scmp.lt.u32.totalorder %s3089_s21, %s3896_s24 }
 0x5ac   : > { %p3091_p7 = pnand %p3090_p4, %p3271_p5 }
 0x5ad   : > { %p3096_p11 = por %p3095_p10, %p3094_p9 }
 0x5ae   : > { %p3092_p8 = pneg %p3091_p7 }
 0x5af   : > { %p3098_p13 = por %p3097_p12, %p3096_p11 }
 0x5b1   : > { %p3099_p0 = pnand %p3098_p13, %p3092_p8 }
 0x5b3   : > { %3102 = shalt.err (!%p3099_p0)
}
 0x5b4   : > { %s3141_s28 = smov 128   ;;  %s3142_s22 = smov 8  }
 0x5b5   : > { %2921 = dma.vmem_to_hbm [thread:$0]  (%p3271_p5), %s3898_s19, 1024, %s3896_s24, %s3904_s27, %s3141_s28, %s3141_s28, %s3142_s22  }
 0x5b6 PF: > { %s3992_s30 = sld [smem:[#allocation7_spill]]  ;;  %s3993_s29 = sld [smem:[#allocation5_spill]] }
 0x5bc   : > { %p2927_p1 = scmp.ge.s32.totalorder %s3992_s30, 2  ;;  %s2404_s26 = sand.u32 1, %s3993_s29  }
 0x5bd   : > { %s2405_s21 = scalar_lea.sflag [#allocation3], %s2404_s26 }
 0x5be   : > { %p2924_p2 = pnand %p2927_p1, %p3275_p6 }
 0x5c0   : > { %3120 = dma.done.wait (!%p2924_p2), %s2405_s21, 1024  }
 0x5c1   : > { %3122 = vsyncadd (!%p2924_p2), %s2405_s21, 4294966272  ;;  %s3995_s27 = sld [smem:[#allocation8_spill]]  ;;  %s3996_s18 = sld [smem:[#allocation6_spill]] }
 0x5c2   : > { %s3997_s26 = sld [smem:[#allocation9_spill]]  ;;  %s3998_s24 = smov %s3129_s25 }
 0x5c7   : > { %p27_p3 = scmp.ge.s32.totalorder %s3995_s27, 4   ;;  %s3999_s25 = smov %s3996_s18 }
 0x5c9   :  { %29 = sbr.rel (!%p27_p3) target bundleno = 7 (0x7), region = 123 }
 0x5d0   :  { %2410 = vsyncpa [#allocation3], 1 }
 0x5d1   :  { %2412 = vsyncpa [#allocation3 + $0x1], 1 }

</bundles_post_ra>
